<compile_context>
chip_gen: v7x
topology: tpu7x:2x2x1
jax: 0.10.0
libtpu: 0.0.40
codegen_flags: <defaults>
</compile_context>

<pallas_src>
import math

import jax
import jax.numpy as jnp
from jax.experimental import pallas as pl
from jax.experimental.pallas import tpu as pltpu

NEG_SLOPE = 0.01  # nn.LeakyReLU() default negative slope


def _leaky_relu(x):
    return jnp.where(x >= 0, x, NEG_SLOPE * x)


def _cdiv(a, b):
    return -(-a // b)


def gat_kernel(q_ref, k_ref, v_ref, wt_ref, out_ref, attn_ref):
    """One grid step processes TB (batch*period) slabs fully in VMEM.

    q_ref/k_ref/v_ref : (TB, S, F) blocks
    wt_ref            : (F, F) pre-transposed Linear weight (W.T), grid-invariant
    out_ref           : (TB, S*F) lane-dense aggregated output block
    attn_ref          : (TB, S*S) lane-dense attention-distribution block
    """
    TB, S, F = q_ref.shape
    n = TB * S

    wt = wt_ref[...].astype(jnp.float32)  # already W.T (transposed in wrapper)
    inv_scale = jnp.float32(1.0 / math.sqrt(F))

    # Three direct projections (no staging scratch): the reshape (TB,S,F)->(n,F)
    # is a cheap leading-dim collapse (last dim untouched).
    Q = jnp.dot(q_ref[...].reshape(n, F).astype(jnp.float32), wt,
                preferred_element_type=jnp.float32).reshape(TB, S, F) * inv_scale
    K = jnp.dot(k_ref[...].reshape(n, F).astype(jnp.float32), wt,
                preferred_element_type=jnp.float32).reshape(TB, S, F)
    V = jnp.dot(v_ref[...].reshape(n, F).astype(jnp.float32), wt,
                preferred_element_type=jnp.float32).reshape(TB, S, F)

    # QK^T via batched dot_general: the MXU ingests the transposed RHS natively,
    # no XLU transpose of K is materialized. 1/sqrt(F) already folded into Q.
    a = jnp.einsum('bqd,bkd->bqk', Q, K, preferred_element_type=jnp.float32)

    # TODO(synk): optional `mask` argument of the PyTorch forward (masked_fill
    # with -1e10) is not implemented; only the mask=None path is supported.
    e = _leaky_relu(a)

    # Numerically-stable softmax over the last dim.
    m = jnp.max(e, axis=-1, keepdims=True)
    p = jnp.exp(e - m)
    denom = jnp.sum(p, axis=-1, keepdims=True)
    # Exact reciprocal: approx=True (EUP vrcp, ~2^-12 rel err) could break the
    # 1e-4 rtol check against the f32 reference.
    attn = p * pl.reciprocal(denom, approx=False)

    # TODO(synk): nn.Dropout is identity in eval mode; training-mode dropout not applied.
    out = _leaky_relu(
        jnp.einsum('bqk,bkd->bqd', attn, V, preferred_element_type=jnp.float32))

    # TODO(synk): for large stock counts S, switch to flash-style KV tiling
    # (trailing "arbitrary" grid axis + running max/denominator scratch) so the
    # S^2 slabs don't dominate VMEM; at small S the dense path is cheaper.

    # Lane-dense stores: flatten to (TB, S*F) / (TB, S*S) so the last dim is a
    # full multiple of 128 lanes -> unmasked vst + dense HBM writeback tiles.
    out_ref[...] = out.reshape(TB, S * F).astype(out_ref.dtype)
    attn_ref[...] = attn.reshape(TB, S * S).astype(attn_ref.dtype)


def _num_tensorcores():
    """Best-effort count of TensorCores per JAX device (v7x = 2, else 1)."""
    try:
        dev = jax.devices()[0]
        n = getattr(dev, "num_cores", None)
        if n:
            return int(n)
        kind = (getattr(dev, "device_kind", "") or "").lower()
        if "v7" in kind:
            return 2
    except Exception:
        pass
    return 1


def _vmem_bytes_per_step(TB, S, F):
    """Rough per-grid-step VMEM estimate (f32, lane/sublane padded, 2x buffered)."""
    LANE, SUB, F32 = 128, 8, 4

    def pad(n, m):
        return _cdiv(n, m) * m

    Fp = pad(F, LANE)
    Sp = pad(S, LANE)
    rows = pad(S, SUB)
    # Double-buffered input blocks: 3 x (TB, S, F), F lane-padded.
    in_b = 2 * 3 * TB * rows * Fp * F32
    # Double-buffered weight block (F, F).
    w_b = 2 * pad(F, SUB) * Fp * F32
    # Double-buffered lane-dense outputs: (TB, S*F) + (TB, S*S).
    out_b = 2 * pad(TB, SUB) * (pad(S * F, LANE) + pad(S * S, LANE)) * F32
    # Live f32 intermediates: Q/K/V (TB,S,Fp) + ~4 score-sized slabs (TB,S,Sp).
    live_b = TB * rows * (3 * Fp + 4 * Sp) * F32
    return in_b + w_b + out_b + live_b


def graph_attention_forward(query, key, value, weight):
    """query/key/value: (B, P, S, F); weight: (F, F) nn.Linear weight (no bias).

    Returns:
      output: (B, P, S, F)
      attention_distribution: (B, P, S, S)
    """
    B, P, S, F = query.shape
    BP = B * P
    q = query.reshape(BP, S, F)
    k = key.reshape(BP, S, F)
    v = value.reshape(BP, S, F)

    # Hoist the (grid-invariant) weight transpose out of the kernel.
    w_t = weight.T  # nn.Linear: y = x @ W.T

    # ---- VMEM-budgeted TB selection -------------------------------------
    # Work in row-groups of 8 (sublane granularity) so the flattened 2-D output
    # blocks (TB, S*F)/(TB, S*S) satisfy the (8,128) tiling constraint.
    GR = 8
    VMEM_BUDGET = 40 * 1024 * 1024  # conservative across v5e/v6e/v7x
    num_cores = _num_tensorcores()

    bp_groups = _cdiv(BP, GR)
    max_groups = 1
    for g in range(bp_groups, 0, -1):
        if _vmem_bytes_per_step(g * GR, S, F) <= VMEM_BUDGET:
            max_groups = g
            break

    # Single grid step on single-TC chips (v5e/v6e) when it fits; >=2 even
    # steps on 2-TC chips (v7x) so both TensorCores get work.
    min_steps = 2 if num_cores >= 2 else 1
    steps = max(min_steps, _cdiv(bp_groups, max_groups))
    if num_cores >= 2 and steps % 2:
        steps += 1
    groups_per_step = _cdiv(bp_groups, steps)
    TB = groups_per_step * GR
    BP_pad = groups_per_step * steps * GR

    if BP_pad != BP:
        pad_rows = BP_pad - BP
        q = jnp.pad(q, ((0, pad_rows), (0, 0), (0, 0)))
        k = jnp.pad(k, ((0, pad_rows), (0, 0), (0, 0)))
        v = jnp.pad(v, ((0, pad_rows), (0, 0), (0, 0)))

    need = _vmem_bytes_per_step(TB, S, F)
    vmem_limit = int(min(max(2 * need, 32 << 20), 56 << 20))
    # ----------------------------------------------------------------------

    qkv_spec = pl.BlockSpec((TB, S, F), lambda i: (i, 0, 0))
    w_spec = pl.BlockSpec((F, F), lambda i: (0, 0))

    out_flat, attn_flat = pl.pallas_call(
        gat_kernel,
        out_shape=(
            jax.ShapeDtypeStruct((BP_pad, S * F), query.dtype),
            jax.ShapeDtypeStruct((BP_pad, S * S), query.dtype),
        ),
        grid_spec=pltpu.PrefetchScalarGridSpec(
            num_scalar_prefetch=0,
            grid=(steps,),
            in_specs=[qkv_spec, qkv_spec, qkv_spec, w_spec],
            out_specs=[
                pl.BlockSpec((TB, S * F), lambda i: (i, 0)),
                pl.BlockSpec((TB, S * S), lambda i: (i, 0)),
            ],
        ),
        compiler_params=pltpu.CompilerParams(
            dimension_semantics=("parallel",),
            vmem_limit_bytes=vmem_limit),
    )(q, k, v, w_t)

    out = out_flat[:BP].reshape(B, P, S, F)
    attn = attn_flat[:BP].reshape(B, P, S, S)
    return out, attn


def reference_forward(query, key, value, weight):
    # Pure-JAX reference mirroring the PyTorch forward (eval mode, mask=None).
    w_t = weight.T
    Q = query @ w_t
    K = key @ w_t
    V = value @ w_t
    a = jnp.matmul(Q, jnp.swapaxes(K, -1, -2)) / jnp.sqrt(jnp.float32(query.shape[-1]))
    e = _leaky_relu(a)
    attn = jax.nn.softmax(e, axis=-1)
    out = _leaky_relu(jnp.matmul(attn, V))
    return out, attn


if __name__ == "__main__":
    key0 = jax.random.PRNGKey(0)
    B, P, S, F = 2, 4, 16, 32  # batch, period, stock, risk_factor(features)

    k_q, k_k, k_v, k_w = jax.random.split(key0, 4)
    query = jax.random.normal(k_q, (B, P, S, F), dtype=jnp.float32)
    keyt = jax.random.normal(k_k, (B, P, S, F), dtype=jnp.float32)
    value = jax.random.normal(k_v, (B, P, S, F), dtype=jnp.float32)
    # Deterministic init of nn.Linear(F, F, bias=False) weight.
    weight = jax.random.normal(k_w, (F, F), dtype=jnp.float32) * (1.0 / jnp.sqrt(F))

    out, attn = graph_attention_forward(query, keyt, value, weight)
    out = jax.block_until_ready(out)
    attn = jax.block_until_ready(attn)

    ref_out, ref_attn = reference_forward(query, keyt, value, weight)
    assert jnp.allclose(out, ref_out, atol=1e-4, rtol=1e-4)
    assert jnp.allclose(attn, ref_attn, atol=1e-4, rtol=1e-4)

    print("KERNEL_OK")
</pallas_src>

<mosaic_0001>
module attributes {stable_mosaic.version = 11 : i64} {
  func.func @gat_kernel(%arg0: i32, %arg1: memref<8x16x32xf32, #tpu.memory_space<vmem>>, %arg2: memref<8x16x32xf32, #tpu.memory_space<vmem>>, %arg3: memref<8x16x32xf32, #tpu.memory_space<vmem>>, %arg4: memref<32x32xf32, #tpu.memory_space<vmem>>, %arg5: memref<8x512xf32, #tpu.memory_space<vmem>>, %arg6: memref<8x256xf32, #tpu.memory_space<vmem>>) attributes {dimension_semantics = [#tpu.dimension_semantics<parallel>], iteration_bounds = array<i64: 1>, scalar_prefetch = 0 : i64, scratch_operands = 0 : i64, tpu.core_type = #tpu.core_type<tc>, window_params = [{transform_indices = @transform_0, window_bounds = array<i64: 8, 16, 32>}, {transform_indices = @transform_1, window_bounds = array<i64: 8, 16, 32>}, {transform_indices = @transform_2, window_bounds = array<i64: 8, 16, 32>}, {pipeline_mode = #tpu.pipeline_mode<synchronous>, transform_indices = @transform_3, window_bounds = array<i64: 32, 32>}, {transform_indices = @transform_4, window_bounds = array<i64: 8, 512>}, {transform_indices = @transform_5, window_bounds = array<i64: 8, 256>}]} {
    %c0 = arith.constant 0 : index
    %c0_0 = arith.constant 0 : index
    %0 = vector.load %arg4[%c0, %c0_0] : memref<32x32xf32, #tpu.memory_space<vmem>>, vector<32x32xf32>
    %c0_1 = arith.constant 0 : index
    %c0_2 = arith.constant 0 : index
    %c0_3 = arith.constant 0 : index
    %1 = vector.load %arg1[%c0_1, %c0_2, %c0_3] : memref<8x16x32xf32, #tpu.memory_space<vmem>>, vector<8x16x32xf32>
    %2 = vector.shape_cast %1 : vector<8x16x32xf32> to vector<128x32xf32>
    %cst = arith.constant dense<0.000000e+00> : vector<128x32xf32>
    %3 = tpu.matmul %2, %0, %cst {dimension_numbers = #tpu.dot_dimension_numbers<[1], [0], [0], [1], [0, 0, 1, 1], [], []>} : vector<128x32xf32>, vector<32x32xf32>, vector<128x32xf32> -> vector<128x32xf32>
    %4 = vector.shape_cast %3 : vector<128x32xf32> to vector<8x16x32xf32>
    %cst_4 = arith.constant 0.176776692 : f32
    %5 = vector.broadcast %cst_4 : f32 to vector<8x16x32xf32>
    %6 = arith.mulf %4, %5 : vector<8x16x32xf32>
    %c0_5 = arith.constant 0 : index
    %c0_6 = arith.constant 0 : index
    %c0_7 = arith.constant 0 : index
    %7 = vector.load %arg2[%c0_5, %c0_6, %c0_7] : memref<8x16x32xf32, #tpu.memory_space<vmem>>, vector<8x16x32xf32>
    %8 = vector.shape_cast %7 : vector<8x16x32xf32> to vector<128x32xf32>
    %cst_8 = arith.constant dense<0.000000e+00> : vector<128x32xf32>
    %9 = tpu.matmul %8, %0, %cst_8 {dimension_numbers = #tpu.dot_dimension_numbers<[1], [0], [0], [1], [0, 0, 1, 1], [], []>} : vector<128x32xf32>, vector<32x32xf32>, vector<128x32xf32> -> vector<128x32xf32>
    %10 = vector.shape_cast %9 : vector<128x32xf32> to vector<8x16x32xf32>
    %c0_9 = arith.constant 0 : index
    %c0_10 = arith.constant 0 : index
    %c0_11 = arith.constant 0 : index
    %11 = vector.load %arg3[%c0_9, %c0_10, %c0_11] : memref<8x16x32xf32, #tpu.memory_space<vmem>>, vector<8x16x32xf32>
    %12 = vector.shape_cast %11 : vector<8x16x32xf32> to vector<128x32xf32>
    %cst_12 = arith.constant dense<0.000000e+00> : vector<128x32xf32>
    %13 = tpu.matmul %12, %0, %cst_12 {dimension_numbers = #tpu.dot_dimension_numbers<[1], [0], [0], [1], [0, 0, 1, 1], [], []>} : vector<128x32xf32>, vector<32x32xf32>, vector<128x32xf32> -> vector<128x32xf32>
    %14 = vector.shape_cast %13 : vector<128x32xf32> to vector<8x16x32xf32>
    "tpu.trace_start"() <{level = 10 : i32, message = "bqd,bkd->bqk"}> : () -> ()
    %cst_13 = arith.constant dense<0.000000e+00> : vector<8x16x16xf32>
    %15 = tpu.matmul %6, %10, %cst_13 {dimension_numbers = #tpu.dot_dimension_numbers<[2], [2], [1], [1], [0, 0, 0, 1, 1, 1], [0], [0]>} : vector<8x16x32xf32>, vector<8x16x32xf32>, vector<8x16x16xf32> -> vector<8x16x16xf32>
    %cst_14 = arith.constant 0.000000e+00 : f32
    "tpu.trace_stop"() : () -> ()
    %16 = vector.broadcast %cst_14 : f32 to vector<8x16x16xf32>
    %17 = arith.cmpf oge, %15, %16 : vector<8x16x16xf32>
    %cst_15 = arith.constant 0.00999999977 : f32
    %18 = vector.broadcast %cst_15 : f32 to vector<8x16x16xf32>
    %19 = arith.mulf %18, %15 : vector<8x16x16xf32>
    %20 = arith.select %17, %15, %19 : vector<8x16x16xi1>, vector<8x16x16xf32>
    %cst_16 = arith.constant dense<0xFF800000> : vector<8x16xf32>
    %21 = vector.multi_reduction <maximumf>, %20, %cst_16 [2] : vector<8x16x16xf32> to vector<8x16xf32>
    %22 = vector.shape_cast %21 : vector<8x16xf32> to vector<8x16x1xf32>
    %23 = vector.broadcast %22 : vector<8x16x1xf32> to vector<8x16x16xf32>
    %24 = arith.subf %20, %23 : vector<8x16x16xf32>
    %25 = math.exp %24 : vector<8x16x16xf32>
    %cst_17 = arith.constant dense<0.000000e+00> : vector<8x16xf32>
    %26 = vector.multi_reduction <add>, %25, %cst_17 [2] : vector<8x16x16xf32> to vector<8x16xf32>
    %27 = vector.shape_cast %26 : vector<8x16xf32> to vector<8x16x1xf32>
    %28 = tpu.reciprocal %27 : vector<8x16x1xf32> -> vector<8x16x1xf32>
    %29 = vector.broadcast %28 : vector<8x16x1xf32> to vector<8x16x16xf32>
    %30 = arith.mulf %25, %29 : vector<8x16x16xf32>
    "tpu.trace_start"() <{level = 10 : i32, message = "bqk,bkd->bqd"}> : () -> ()
    %cst_18 = arith.constant dense<0.000000e+00> : vector<8x16x32xf32>
    %31 = tpu.matmul %30, %14, %cst_18 {dimension_numbers = #tpu.dot_dimension_numbers<[2], [1], [1], [2], [0, 0, 0, 1, 1, 2], [0], [0]>} : vector<8x16x16xf32>, vector<8x16x32xf32>, vector<8x16x32xf32> -> vector<8x16x32xf32>
    %cst_19 = arith.constant 0.000000e+00 : f32
    "tpu.trace_stop"() : () -> ()
    %32 = vector.broadcast %cst_19 : f32 to vector<8x16x32xf32>
    %33 = arith.cmpf oge, %31, %32 : vector<8x16x32xf32>
    %cst_20 = arith.constant 0.00999999977 : f32
    %34 = vector.broadcast %cst_20 : f32 to vector<8x16x32xf32>
    %35 = arith.mulf %34, %31 : vector<8x16x32xf32>
    %36 = arith.select %33, %31, %35 : vector<8x16x32xi1>, vector<8x16x32xf32>
    %37 = vector.shape_cast %36 : vector<8x16x32xf32> to vector<8x512xf32>
    %c0_21 = arith.constant 0 : index
    %c0_22 = arith.constant 0 : index
    %38 = vector.load %arg5[%c0_21, %c0_22] : memref<8x512xf32, #tpu.memory_space<vmem>>, vector<8x512xf32>
    tpu.vector_store %arg5[%c0_21, %c0_22], %37 {strides = array<i32>} : memref<8x512xf32, #tpu.memory_space<vmem>>, vector<8x512xf32>,
    %39 = vector.shape_cast %30 : vector<8x16x16xf32> to vector<8x256xf32>
    %c0_23 = arith.constant 0 : index
    %c0_24 = arith.constant 0 : index
    %40 = vector.load %arg6[%c0_23, %c0_24] : memref<8x256xf32, #tpu.memory_space<vmem>>, vector<8x256xf32>
    tpu.vector_store %arg6[%c0_23, %c0_24], %39 {strides = array<i32>} : memref<8x256xf32, #tpu.memory_space<vmem>>, vector<8x256xf32>,
    return
  }
  func.func @transform_0(%arg0: i32) -> (i32, i32, i32) {
    %c0_i32 = arith.constant 0 : i32
    %c0_i32_0 = arith.constant 0 : i32
    %c0_i32_1 = arith.constant 0 : i32
    return %arg0, %c0_i32, %c0_i32_0 : i32, i32, i32
  }
  func.func @transform_1(%arg0: i32) -> (i32, i32, i32) {
    %c0_i32 = arith.constant 0 : i32
    %c0_i32_0 = arith.constant 0 : i32
    %c0_i32_1 = arith.constant 0 : i32
    return %arg0, %c0_i32, %c0_i32_0 : i32, i32, i32
  }
  func.func @transform_2(%arg0: i32) -> (i32, i32, i32) {
    %c0_i32 = arith.constant 0 : i32
    %c0_i32_0 = arith.constant 0 : i32
    %c0_i32_1 = arith.constant 0 : i32
    return %arg0, %c0_i32, %c0_i32_0 : i32, i32, i32
  }
  func.func @transform_3(%arg0: i32) -> (i32, i32) {
    %c0_i32 = arith.constant 0 : i32
    %c0_i32_0 = arith.constant 0 : i32
    %c0_i32_1 = arith.constant 0 : i32
    return %c0_i32, %c0_i32_0 : i32, i32
  }
  func.func @transform_4(%arg0: i32) -> (i32, i32) {
    %c0_i32 = arith.constant 0 : i32
    %c0_i32_0 = arith.constant 0 : i32
    return %arg0, %c0_i32 : i32, i32
  }
  func.func @transform_5(%arg0: i32) -> (i32, i32) {
    %c0_i32 = arith.constant 0 : i32
    %c0_i32_0 = arith.constant 0 : i32
    return %arg0, %c0_i32 : i32, i32
  }
}

</mosaic_0001>

<bundles_post_ra>
// kernel: tpu_custom_call.1
= control target key start
LH: loop header
LB: loop body
LE: loop exit
PB: predicated region body
PF: predicated region fallthrough
CT: control target
= control target key end

     0   :  { %11 = vsyncpa [#allocation3], 0  ;;  %s4503_s0 = inlined_call_operand.hbm [shape: f32[8,16,32], index: 0, kind: input, shape index: {}]   ;;  %s4504_s1 = inlined_call_operand.hbm [shape: f32[8,16,32], index: 1, kind: input, shape index: {}]   ;;  %s4505_s2 = inlined_call_operand.hbm [shape: f32[8,16,32], index: 2, kind: input, shape index: {}]   ;;  %s4506_s3 = inlined_call_operand.hbm [shape: f32[32,32], index: 3, kind: input, shape index: {}]   ;;  %s4507_s4 = inlined_call_operand.hbm [shape: f32[8,512], index: 4, kind: output, shape index: {0}]   ;;  %s4508_s5 = inlined_call_operand.hbm [shape: f32[8,256], index: 5, kind: output, shape index: {1}]  }
   0x1   :  { %12 = vsyncpa [#allocation6], 0 }
   0x2   :  { %13 = vsyncpa [#allocation9], 0 }
   0x3   :  { %14 = vsyncpa [#allocation4], 0 }
   0x4   :  { %15 = vsyncpa [#allocation12], 0  ;;  %s3812_s18 = smov [#allocation5]   ;;  %s3813_s20 = smov [#allocation2]  }
   0x5   :  { %s33_s19 = sshll.u32 %s3812_s18, 4  ;;  %s21_s21 = sshll.u32 %s3813_s20, 4  ;;  %s34_s19 = int_to_ptr.vmem [resolvable:$true] %s33_s19  ;;  %s3859_s21 = int_to_ptr.vmem [resolvable:$true] %s21_s21 }
   0x6   :  { %s3670_s24 = scalar_lea.hbm %s4504_s1, 2048 }
   0x7   :  { %p3671_p0 = scmp.ne.s32.totalorder %s4504_s1, %s3670_s24  ;;  %p3674_p1 = scmp.lt.u32.totalorder %s3670_s24, %s4504_s1 }
   0x9   :  { %p3676_p2 = pnand %p3674_p1, %p3671_p0 }
   0xb   :  { %3679 = shalt.err (!%p3676_p2)
}
   0xc   :  { %s3680_s29 = scalar_lea.vmem %s34_s19, 2048  ;;  %p3685_p4 = scmp.lt.s32.totalorder %s34_s19, %s34_s19 }
   0xd   :  { %p3681_p3 = scmp.ne.s32.totalorder %s34_s19, %s3680_s29  ;;  %p3686_p5 = scmp.lt.s32.totalorder %s3680_s29, %s3680_s29 }
   0xf   :  { %p3687_p6 = por %p3686_p5, %p3685_p4 }
  0x11   :  { %p3688_p7 = pnand %p3687_p6, %p3681_p3 }
  0x13   :  { %3691 = shalt.err (!%p3688_p7)
}
  0x14   :  { %s3814_s30 = smov 128   ;;  %s3815_s6 = smov 8  }
  0x15   :  { %39 = dma.hbm_to_vmem [thread:$0]  %s4504_s1, 2048, %s34_s19, [#allocation6], %s3814_s30, %s3814_s30, %s3815_s6  }
  0x16   :  { %s3692_s11 = scalar_lea.hbm %s4503_s0, 2048 }
  0x17   :  { %p3693_p8 = scmp.ne.s32.totalorder %s4503_s0, %s3692_s11  ;;  %p3696_p9 = scmp.lt.u32.totalorder %s3692_s11, %s4503_s0 }
  0x19   :  { %p3698_p10 = pnand %p3696_p9, %p3693_p8 }
  0x1b   :  { %3701 = shalt.err (!%p3698_p10)
}
  0x1c   :  { %s3702_s16 = scalar_lea.vmem %s3859_s21, 2048  ;;  %p3707_p12 = scmp.lt.s32.totalorder %s3859_s21, %s3859_s21 }
  0x1d   :  { %p3703_p11 = scmp.ne.s32.totalorder %s3859_s21, %s3702_s16  ;;  %p3708_p13 = scmp.lt.s32.totalorder %s3702_s16, %s3702_s16 }
  0x1f   :  { %p3709_p0 = por %p3708_p13, %p3707_p12 }
  0x21   :  { %p3710_p1 = pnand %p3709_p0, %p3703_p11 }
  0x23   :  { %3713 = shalt.err (!%p3710_p1)
}
  0x24   :  { %27 = dma.hbm_to_vmem [thread:$0]  %s4503_s0, 2048, %s3859_s21, [#allocation3], %s3814_s30, %s3814_s30, %s3815_s6  }
  0x25   :  { %s3816_s18 = smov [#allocation7]   ;;  %s3817_s20 = smov [#allocation8]  }
  0x26   :  { %s45_s19 = sshll.u32 %s3816_s18, 4  ;;  %s57_s22 = sshll.u32 %s3817_s20, 4  ;;  %s46_s19 = int_to_ptr.vmem [resolvable:$true] %s45_s19  ;;  %s3896_s22 = int_to_ptr.vmem [resolvable:$true] %s57_s22 }
  0x27   :  { %s3714_s25 = scalar_lea.hbm %s4505_s2, 2048 }
  0x28   :  { %p3715_p2 = scmp.ne.s32.totalorder %s4505_s2, %s3714_s25  ;;  %p3718_p3 = scmp.lt.u32.totalorder %s3714_s25, %s4505_s2 }
  0x2a   :  { %p3720_p4 = pnand %p3718_p3, %p3715_p2 }
  0x2c   :  { %3723 = shalt.err (!%p3720_p4)
}
  0x2d   :  { %s3724_s0 = scalar_lea.vmem %s46_s19, 2048  ;;  %p3729_p6 = scmp.lt.s32.totalorder %s46_s19, %s46_s19 }
  0x2e   :  { %p3725_p5 = scmp.ne.s32.totalorder %s46_s19, %s3724_s0  ;;  %p3730_p7 = scmp.lt.s32.totalorder %s3724_s0, %s3724_s0 }
  0x30   :  { %p3731_p8 = por %p3730_p7, %p3729_p6 }
  0x32   :  { %p3732_p9 = pnand %p3731_p8, %p3725_p5 }
  0x34   :  { %3735 = shalt.err (!%p3732_p9)
}
  0x35   :  { %51 = dma.hbm_to_vmem [thread:$0]  %s4505_s2, 2048, %s46_s19, [#allocation6], %s3814_s30, %s3814_s30, %s3815_s6  }
  0x36   :  { %s3736_s10 = scalar_lea.hbm %s4506_s3, 512 }
  0x37   :  { %p3737_p10 = scmp.ne.s32.totalorder %s4506_s3, %s3736_s10  ;;  %p3740_p11 = scmp.lt.u32.totalorder %s3736_s10, %s4506_s3 }
  0x39   :  { %p3742_p12 = pnand %p3740_p11, %p3737_p10 }
  0x3b   :  { %3745 = shalt.err (!%p3742_p12)
}
  0x3c   :  { %s3746_s15 = scalar_lea.vmem %s3896_s22, 512  ;;  %p3751_p0 = scmp.lt.s32.totalorder %s3896_s22, %s3896_s22 }
  0x3d   :  { %p3747_p13 = scmp.ne.s32.totalorder %s3896_s22, %s3746_s15  ;;  %p3752_p1 = scmp.lt.s32.totalorder %s3746_s15, %s3746_s15 }
  0x3f   :  { %p3753_p2 = por %p3752_p1, %p3751_p0 }
  0x41   :  { %p3754_p3 = pnand %p3753_p2, %p3747_p13 }
  0x43   :  { %3757 = shalt.err (!%p3754_p3)
}
  0x44   :  { %63 = dma.hbm_to_vmem [thread:$0]  %s4506_s3, 512, %s3896_s22, [#allocation9], %s3814_s30, %s3814_s30, %s3815_s6  }
  0x45   :  { %3802 = dma.done.wait [#allocation3], 2048  }
  0x46   :  { %3803 = vsyncadd [#allocation3], 4294965248 }
  0x47   :  { %3804 = dma.done.wait [#allocation6], 4096  }
  0x48   :  { %3805 = vsyncadd [#allocation6], 4294963200 }
  0x49   :  { %3806 = dma.done.wait [#allocation9], 512  }
  0x4a   :  { %3807 = vsyncadd [#allocation9], 4294966784  ;;  %vm96_vm0 = vcmask 261120   ;;  %v76_v0 = vld [vmem:[#allocation8] sm:$0xff]  ;;  %v77_v1 = vld [vmem:[#allocation8 + $0x8] sm:$0xff]  ;;  %vm1468_vm3 = vcmask 130048  }
  0x4b   :  { %v78_v2 = vld [vmem:[#allocation8 + $0x10] sm:$0xff]  ;;  %v3485_v3 = vpack.c.bf16 %v77_v1, %v76_v0  ;;  %v79_v4 = vld [vmem:[#allocation8 + $0x18] sm:$0xff]  ;;  %v306_v5 = vld [vmem:[#allocation5] sm:$0xff]  ;;  %s3820_s3 = smov 16   ;;  %s3821_s30 = smov 48  }
  0x4c   :  { %v3489_v6 = vpack.c.bf16 %v79_v4, %v78_v2  ;;  %3317 = vmatprep.mubr.msk.f32.mxu1 %vm96_vm0, %v306_v5  ;;  %v80_v7 = vld [vmem:[#allocation2] sm:$0xff]  ;;  %v307_v8 = vld [vmem:[#allocation5 + $0x8] sm:$0xff]  ;;  %v308_v10 = vld [vmem:[#allocation5 + $0x10] sm:$0xff]  ;;  %s3822_s6 = smov 64   ;;  %s3823_s1 = smov 32  }
  0x4d   :  { %3494 = vmatprep.subr.bf16.mxu1 %v3485_v3  ;;  %3486 = vmatprep.subr.bf16.mxu0 %v3485_v3  ;;  %v81_v9 = vld [vmem:[#allocation2 + $0x8] sm:$0xff]  ;;  %v82_v11 = vld [vmem:[#allocation2 + $0x10] sm:$0xff]  ;;  %v309_v12 = vld [vmem:[#allocation5 + $0x18] sm:$0xff]  ;;  %s3824_s17 = smov 80   ;;  %s3825_s18 = smov 96  }
  0x4e   :  { %3496 = vmatpush3.bf16.msra.mxu1 %v3485_v3  ;;  %3488 = vmatpush3.bf16.msra.mxu0 %v3485_v3  ;;  %v83_v13 = vld [vmem:[#allocation2 + $0x18] sm:$0xff]  ;;  %v310_v14 = vld [vmem:[#allocation5 + $0x20] sm:$0xff]  ;;  %v311_v16 = vld [vmem:[#allocation5 + $0x28] sm:$0xff]  ;;  %s3826_s19 = smov 112   ;;  %s3827_s20 = smov [#allocation10]  }
  0x4f   :  { %3498 = vmatprep.subr.bf16.mxu1 %v3489_v6  ;;  %3490 = vmatprep.subr.bf16.mxu0 %v3489_v6  ;;  %v84_v15 = vld [vmem:[#allocation2 + $0x20] sm:$0xff]  ;;  %v85_v17 = vld [vmem:[#allocation2 + $0x28] sm:$0xff]  ;;  %v312_v18 = vld [vmem:[#allocation5 + $0x30] sm:$0xff]  ;;  %s3032_s22 = sshll.u32 %s3827_s20, 4  ;;  %s3828_s23 = smov [#allocation11]   ;;  %s3033_s22 = int_to_ptr.vmem [resolvable:$true] %s3032_s22 }
  0x50   :  { %3285 = vmatprep.mubr.msk.f32.mxu0 %vm96_vm0, %v80_v7  ;;  %v86_v19 = vld [vmem:[#allocation2 + $0x30] sm:$0xff]  ;;  %v313_v20 = vld [vmem:[#allocation5 + $0x38] sm:$0xff]  ;;  %v314_v22 = vld [vmem:[#allocation5 + $0x40] sm:$0xff]  ;;  %s3042_s24 = sshll.u32 %s3828_s23, 4  ;;  %s3758_s25 = scalar_lea.vmem %s3033_s22, 512  ;;  %s3043_s24 = int_to_ptr.vmem [resolvable:$true] %s3042_s24 }
  0x51   :  { %v87_v21 = vld [vmem:[#allocation2 + $0x38] sm:$0xff]  ;;  %v88_v23 = vld [vmem:[#allocation2 + $0x40] sm:$0xff]  ;;  %v315_v24 = vld [vmem:[#allocation5 + $0x48] sm:$0xff]  ;;  %p3759_p4 = scmp.ne.s32.totalorder %s3033_s22, %s3758_s25  ;;  %p3763_p5 = scmp.lt.s32.totalorder %s3033_s22, %s3033_s22 }
  0x52   :  { %3500 = vmatpush3.bf16.msra.mxu1 %v3489_v6  ;;  %3492 = vmatpush3.bf16.msra.mxu0 %v3489_v6  ;;  %v89_v25 = vld [vmem:[#allocation2 + $0x48] sm:$0xff]  ;;  %v316_v26 = vld [vmem:[#allocation5 + $0x50] sm:$0xff]  ;;  %v317_v28 = vld [vmem:[#allocation5 + $0x58] sm:$0xff]  ;;  %p3764_p6 = scmp.lt.s32.totalorder %s3758_s25, %s3758_s25 }
  0x53   :  { %3502 = vmatprep.subr.bf16.mxu0 %v3485_v3  ;;  %v90_v27 = vld [vmem:[#allocation2 + $0x50] sm:$0xff]  ;;  %v91_v29 = vld [vmem:[#allocation2 + $0x58] sm:$0xff]  ;;  %v318_v30 = vld [vmem:[#allocation5 + $0x60] sm:$0xff] }
  0x54   :  { %v92_v31 = vld [vmem:[#allocation2 + $0x60] sm:$0xff]  ;;  %v319_v32 = vld [vmem:[#allocation5 + $0x68] sm:$0xff]  ;;  %v320_v34 = vld [vmem:[#allocation5 + $0x70] sm:$0xff]  ;;  %p3765_p7 = por %p3764_p6, %p3763_p5 }
  0x55   :  { %3318 = vmatmul.mubr.msk.f32.vlgmr.msra.gmra.mrb[0].mxu1 %vm96_vm0, %v307_v8  ;;  %3286 = vmatmul.mubr.msk.f32.vlgmr.msra.gmra.mrb[0].mxu0 %vm96_vm0, %v81_v9  ;;  %v93_v33 = vld [vmem:[#allocation2 + $0x68] sm:$0xff]  ;;  %v94_v35 = vld [vmem:[#allocation2 + $0x70] sm:$0xff]  ;;  %v321_v36 = vld [vmem:[#allocation5 + $0x78] sm:$0xff] }
  0x56   :  { %3320 = vmatprep.mubr.msk.f32.mxu1 %vm96_vm0, %v308_v10  ;;  %3288 = vmatprep.mubr.msk.f32.mxu0 %vm96_vm0, %v82_v11  ;;  %v95_v37 = vld [vmem:[#allocation2 + $0x78] sm:$0xff]  ;;  %v515_v38 = vld [vmem:[#allocation7] sm:$0xff]  ;;  %v516_v39 = vld [vmem:[#allocation7 + $0x8] sm:$0xff]  ;;  %p3766_p8 = pnand %p3765_p7, %p3759_p4 }
  0x57   :  { %3504 = vmatpush3.bf16.msra.mxu0 %v3485_v3  ;;  %v517_v40 = vld [vmem:[#allocation7 + $0x10] sm:$0xff]  ;;  %v518_v41 = vld [vmem:[#allocation7 + $0x18] sm:$0xff]  ;;  %v519_v42 = vld [vmem:[#allocation7 + $0x20] sm:$0xff] }
  0x58   :  { %3506 = vmatprep.subr.bf16.mxu0 %v3489_v6  ;;  %v520_v43 = vld [vmem:[#allocation7 + $0x28] sm:$0xff]  ;;  %v521_v44 = vld [vmem:[#allocation7 + $0x30] sm:$0xff]  ;;  %v522_v45 = vld [vmem:[#allocation7 + $0x38] sm:$0xff] }
  0x59   :  { %3321 = vmatmul.mubr.msk.f32.gmra.mrb[2].mxu1 %vm96_vm0, %v309_v12  ;;  %3289 = vmatmul.mubr.msk.f32.gmra.mrb[2].mxu0 %vm96_vm0, %v83_v13  ;;  %v523_v46 = vld [vmem:[#allocation7 + $0x40] sm:$0xff]  ;;  %v524_v47 = vld [vmem:[#allocation7 + $0x48] sm:$0xff]  ;;  %v525_v48 = vld [vmem:[#allocation7 + $0x50] sm:$0xff] }
  0x5a   :  { %3323 = vmatprep.mubr.msk.f32.mxu1 %vm96_vm0, %v310_v14  ;;  %3291 = vmatprep.mubr.msk.f32.mxu0 %vm96_vm0, %v84_v15  ;;  %v526_v49 = vld [vmem:[#allocation7 + $0x58] sm:$0xff]  ;;  %v527_v50 = vld [vmem:[#allocation7 + $0x60] sm:$0xff]  ;;  %v528_v51 = vld [vmem:[#allocation7 + $0x68] sm:$0xff] }
  0x5b   :  { %3508 = vmatpush3.bf16.msra.mxu0 %v3489_v6  ;;  %v529_v52 = vld [vmem:[#allocation7 + $0x70] sm:$0xff]  ;;  %v530_v53 = vld [vmem:[#allocation7 + $0x78] sm:$0xff]  ;;  %vm3983_vm1 = vmpackc.low %vm96_vm0, %vm96_vm0 }
  0x5d   :  { %3324 = vmatmul.mubr.msk.f32.gmra.mrb[4].mxu1 %vm96_vm0, %v311_v16  ;;  %3292 = vmatmul.mubr.msk.f32.gmra.mrb[4].mxu0 %vm96_vm0, %v85_v17 }
  0x5e   :  { %3326 = vmatprep.mubr.msk.f32.mxu1 %vm96_vm0, %v312_v18  ;;  %3294 = vmatprep.mubr.msk.f32.mxu0 %vm96_vm0, %v86_v19 }
  0x61   :  { %3327 = vmatmul.mubr.msk.f32.gmra.mrb[6].mxu1 %vm96_vm0, %v313_v20  ;;  %3295 = vmatmul.mubr.msk.f32.gmra.mrb[6].mxu0 %vm96_vm0, %v87_v21 }
  0x62   :  { %3329 = vmatprep.mubr.msk.f32.mxu1 %vm96_vm0, %v314_v22  ;;  %3297 = vmatprep.mubr.msk.f32.mxu0 %vm96_vm0, %v88_v23 }
  0x65   :  { %3330 = vmatmul.mubr.msk.f32.gmra.mrb[8].mxu1 %vm96_vm0, %v315_v24  ;;  %3298 = vmatmul.mubr.msk.f32.gmra.mrb[8].mxu0 %vm96_vm0, %v89_v25 }
  0x66   :  { %3332 = vmatprep.mubr.msk.f32.mxu1 %vm96_vm0, %v316_v26  ;;  %3300 = vmatprep.mubr.msk.f32.mxu0 %vm96_vm0, %v90_v27 }
  0x69   :  { %3333 = vmatmul.mubr.msk.f32.gmra.mrb[10].mxu1 %vm96_vm0, %v317_v28  ;;  %3301 = vmatmul.mubr.msk.f32.gmra.mrb[10].mxu0 %vm96_vm0, %v91_v29 }
  0x6a   :  { %3335 = vmatprep.mubr.msk.f32.mxu1 %vm96_vm0, %v318_v30  ;;  %3303 = vmatprep.mubr.msk.f32.mxu0 %vm96_vm0, %v92_v31 }
  0x6d   :  { %3336 = vmatmul.mubr.msk.f32.gmra.mrb[12].mxu1 %vm96_vm0, %v319_v32  ;;  %3304 = vmatmul.mubr.msk.f32.gmra.mrb[12].mxu0 %vm96_vm0, %v93_v33 }
  0x6e   :  { %3338 = vmatprep.mubr.msk.f32.mxu1 %vm96_vm0, %v320_v34  ;;  %3306 = vmatprep.mubr.msk.f32.mxu0 %vm96_vm0, %v94_v35 }
  0x71   :  { %3339 = vmatmul.mubr.msk.f32.gmra.mrb[14].mxu1 %vm96_vm0, %v321_v36  ;;  %3307 = vmatmul.mubr.msk.f32.gmra.mrb[14].mxu0 %vm96_vm0, %v95_v37 }
  0x72   :  { %3349 = vmatprep.mubr.msk.f32.mxu0 %vm96_vm0, %v515_v38 }
  0x75   :  { %3350 = vmatmul.mubr.msk.f32.vlgmr.msra.gmra.mrb[16].mxu0 %vm96_vm0, %v516_v39 }
  0x76   :  { %3352 = vmatprep.mubr.msk.f32.mxu0 %vm96_vm0, %v517_v40 }
  0x79   :  { %3353 = vmatmul.mubr.msk.f32.gmra.mrb[18].mxu0 %vm96_vm0, %v518_v41 }
  0x7a   :  { %3355 = vmatprep.mubr.msk.f32.mxu0 %vm96_vm0, %v519_v42 }
  0x7d   :  { %3356 = vmatmul.mubr.msk.f32.gmra.mrb[20].mxu0 %vm96_vm0, %v520_v43 }
  0x7e   :  { %3358 = vmatprep.mubr.msk.f32.mxu0 %vm96_vm0, %v521_v44 }
  0x81   :  { %3359 = vmatmul.mubr.msk.f32.gmra.mrb[22].mxu0 %vm96_vm0, %v522_v45 }
  0x82   :  { %3361 = vmatprep.mubr.msk.f32.mxu0 %vm96_vm0, %v523_v46 }
  0x85   :  { %3362 = vmatmul.mubr.msk.f32.gmra.mrb[24].mxu0 %vm96_vm0, %v524_v47 }
  0x86   :  { %3364 = vmatprep.mubr.msk.f32.mxu0 %vm96_vm0, %v525_v48 }
  0x89   :  { %3365 = vmatmul.mubr.msk.f32.gmra.mrb[26].mxu0 %vm96_vm0, %v526_v49 }
  0x8a   :  { %3367 = vmatprep.mubr.msk.f32.mxu0 %vm96_vm0, %v527_v50 }
  0x8d   :  { %3368 = vmatmul.mubr.msk.f32.gmra.mrb[28].mxu0 %vm96_vm0, %v528_v51 }
  0x8e   :  { %3370 = vmatprep.mubr.msk.f32.mxu0 %vm96_vm0, %v529_v52 }
  0x91   :  { %3371 = vmatmul.mubr.msk.f32.gmra.mrb[30].mxu0 %vm96_vm0, %v530_v53 }
 0x128   :  { %v3319_v54 = vpop.f32.mrb[0].mxu1  ;;  %v3287_v55 = vpop.f32.mrb[0].mxu0 }
 0x129   :  { %v436_v56 = vpop.f32.mrb[1].mxu1  ;;  %v211_v58 = vpop.f32.mrb[1].mxu0  ;;  %v291_v2 = vmul.f32 0.17677669, %v3287_v55 }
 0x12a   :  { %v3509_v59 = vpack.c.bf16 %v3319_v54, %v436_v56  ;;  %v290_v60 = vmul.f32 0.17677669, %v211_v58 }
 0x12c   :  { %3511 = vmatprep.subr.msk.bf16.mxu1 %vm3983_vm1, %v3509_v59  ;;  %v3322_v61 = vpop.f32.mrb[2].mxu1  ;;  %3377 = vmatprep.mubr.msk.f32.mxu1 %vm96_vm0, %v290_v60  ;;  %v3290_v62 = vpop.f32.mrb[2].mxu0 }
 0x12d   :  { %3514 = vmatpush3.bf16.xpose.msk.msra.mxu1 %vm3983_vm1, %v3509_v59  ;;  %v446_v63 = vpop.f32.mrb[3].mxu1  ;;  %v221_v0 = vpop.f32.mrb[3].mxu0  ;;  %v293_v14 = vmul.f32 0.17677669, %v3290_v62 }
 0x12e   :  { %v3515_v1 = vpack.c.bf16 %v3322_v61, %v446_v63  ;;  %v292_v5 = vmul.f32 0.17677669, %v221_v0 }
 0x130   :  { %3517 = vmatprep.subr.msk.bf16.mxu1 %vm3983_vm1, %v3515_v1  ;;  %v3325_v3 = vpop.f32.mrb[4].mxu1  ;;  %v3293_v4 = vpop.f32.mrb[4].mxu0 }
 0x131   :  { %v456_v6 = vpop.f32.mrb[5].mxu1  ;;  %v231_v7 = vpop.f32.mrb[5].mxu0  ;;  %v295_v27 = vmul.f32 0.17677669, %v3293_v4 }
 0x132   :  { %v3521_v8 = vpack.c.bf16 %v3325_v3, %v456_v6  ;;  %v294_v20 = vmul.f32 0.17677669, %v231_v7 }
 0x134   :  { %3378 = vmatmul.mubr.msk.f32.vlgmr.msra.gmra.mrb[16].mxu1 %vm96_vm0, %v291_v2  ;;  %v3328_v9 = vpop.f32.mrb[6].mxu1  ;;  %v3296_v10 = vpop.f32.mrb[6].mxu0 }
 0x135   :  { %3520 = vmatpush3.bf16.xpose.msk.msra.mxu1 %vm3983_vm1, %v3515_v1  ;;  %v466_v11 = vpop.f32.mrb[7].mxu1  ;;  %3384 = vmatprep.mubr.msk.f32.mxu1 %vm96_vm0, %v292_v5  ;;  %v241_v12 = vpop.f32.mrb[7].mxu0  ;;  %v297_v42 = vmul.f32 0.17677669, %v3296_v10 }
 0x136   :  { %v3527_v13 = vpack.c.bf16 %v3328_v9, %v466_v11  ;;  %3523 = vmatprep.subr.msk.bf16.mxu1 %vm3983_vm1, %v3521_v8  ;;  %v296_v31 = vmul.f32 0.17677669, %v241_v12 }
 0x138   :  { %v3331_v15 = vpop.f32.mrb[8].mxu1  ;;  %v3299_v16 = vpop.f32.mrb[8].mxu0 }
 0x139   :  { %v476_v17 = vpop.f32.mrb[9].mxu1  ;;  %v251_v18 = vpop.f32.mrb[9].mxu0  ;;  %v299_v28 = vmul.f32 0.17677669, %v3299_v16 }
 0x13a   :  { %v3533_v19 = vpack.c.bf16 %v3331_v15, %v476_v17  ;;  %v298_v21 = vmul.f32 0.17677669, %v251_v18 }
 0x13c   :  { %3385 = vmatmul.mubr.msk.f32.vlgmr.msra.gmra.mrb[18].mxu1 %vm96_vm0, %v293_v14  ;;  %3535 = vmatprep.subr.msk.bf16.mxu0 %vm3983_vm1, %v3533_v19  ;;  %v3334_v22 = vpop.f32.mrb[10].mxu1  ;;  %v3302_v23 = vpop.f32.mrb[10].mxu0 }
 0x13d   :  { %3526 = vmatpush3.bf16.xpose.msk.msra.mxu1 %vm3983_vm1, %v3521_v8  ;;  %3538 = vmatpush3.bf16.xpose.msk.msra.mxu0 %vm3983_vm1, %v3533_v19  ;;  %v486_v24 = vpop.f32.mrb[11].mxu1  ;;  %v261_v25 = vpop.f32.mrb[11].mxu0  ;;  %v301_v45 = vmul.f32 0.17677669, %v3302_v23 }
 0x13e   :  { %3391 = vmatprep.mubr.msk.f32.mxu1 %vm96_vm0, %v294_v20  ;;  %3529 = vmatprep.subr.msk.bf16.mxu1 %vm3983_vm1, %v3527_v13  ;;  %v3539_v26 = vpack.c.bf16 %v3334_v22, %v486_v24  ;;  %v300_v41 = vmul.f32 0.17677669, %v261_v25 }
 0x13f   :  { %3405 = vmatprep.mubr.msk.f32.mxu0 %vm96_vm0, %v298_v21 }
 0x140   :  { %v3337_v29 = vpop.f32.mrb[12].mxu1  ;;  %v3305_v30 = vpop.f32.mrb[12].mxu0 }
 0x141   :  { %v496_v32 = vpop.f32.mrb[13].mxu1  ;;  %v271_v33 = vpop.f32.mrb[13].mxu0  ;;  %v303_v43 = vmul.f32 0.17677669, %v3305_v30 }
 0x142   :  { %v3545_v34 = vpack.c.bf16 %v3337_v29, %v496_v32  ;;  %v302_v35 = vmul.f32 0.17677669, %v271_v33 }
 0x144   :  { %3392 = vmatmul.mubr.msk.f32.vlgmr.msra.gmra.mrb[20].mxu1 %vm96_vm0, %v295_v27  ;;  %3406 = vmatmul.mubr.msk.f32.vlgmr.msra.gmra.mrb[32].mxu0 %vm96_vm0, %v299_v28  ;;  %v3340_v36 = vpop.f32.mrb[14].mxu1  ;;  %v3308_v37 = vpop.f32.mrb[14].mxu0 }
 0x145   :  { %3532 = vmatpush3.bf16.xpose.msk.msra.mxu1 %vm3983_vm1, %v3527_v13  ;;  %3398 = vmatprep.mubr.msk.f32.mxu1 %vm96_vm0, %v296_v31  ;;  %v506_v38 = vpop.f32.mrb[15].mxu1  ;;  %v281_v39 = vpop.f32.mrb[15].mxu0  ;;  %v305_v46 = vmul.f32 0.17677669, %v3308_v37 }
 0x146   :  { %3547 = vmatprep.subr.msk.bf16.mxu0 %vm3983_vm1, %v3545_v34  ;;  %3541 = vmatprep.subr.msk.bf16.mxu1 %vm3983_vm1, %v3539_v26  ;;  %v3551_v40 = vpack.c.bf16 %v3340_v36, %v506_v38  ;;  %v304_v44 = vmul.f32 0.17677669, %v281_v39 }
 0x147   :  { %3550 = vmatpush3.bf16.xpose.msk.msra.mxu0 %vm3983_vm1, %v3545_v34  ;;  %3419 = vmatprep.mubr.msk.f32.mxu0 %vm96_vm0, %v302_v35 }
 0x148   :  { %v3351_v47 = vpop.f32.mrb[16].mxu0 }
 0x149   :  { %v645_v48 = vpop.f32.mrb[17].mxu0 }
 0x14a   :  { %v3557_v49 = vpack.c.bf16 %v3351_v47, %v645_v48 }
 0x14c   :  { %3399 = vmatmul.mubr.msk.f32.vlgmr.msra.gmra.mrb[22].mxu1 %vm96_vm0, %v297_v42  ;;  %v3354_v50 = vpop.f32.mrb[18].mxu0  ;;  %3558 = vmatprep.subr.bf16.mxu0 %v3557_v49 }
 0x14d   :  { %3544 = vmatpush3.bf16.xpose.msk.msra.mxu1 %vm3983_vm1, %v3539_v26  ;;  %3412 = vmatprep.mubr.msk.f32.mxu1 %vm96_vm0, %v300_v41  ;;  %v655_v51 = vpop.f32.mrb[19].mxu0 }
 0x14e   :  { %3420 = vmatmul.mubr.msk.f32.vlgmr.msra.gmra.mrb[34].mxu0 %vm96_vm0, %v303_v43  ;;  %3553 = vmatprep.subr.msk.bf16.mxu1 %vm3983_vm1, %v3551_v40  ;;  %v3561_v52 = vpack.c.bf16 %v3354_v50, %v655_v51 }
 0x14f   :  { %3560 = vmatpush3.bf16.msra.mxu0 %v3557_v49 }
 0x150   :  { %v3357_v53 = vpop.f32.mrb[20].mxu0 }
 0x151   :  { %v665_v54 = vpop.f32.mrb[21].mxu0 }
 0x152   :  { %v4035_v55 = vpack.c.bf16 %v3357_v53, %v665_v54 }
 0x154   :  { %3413 = vmatmul.mubr.msk.f32.vlgmr.msra.gmra.mrb[24].mxu1 %vm96_vm0, %v301_v45  ;;  %v3360_v56 = vpop.f32.mrb[22].mxu0  ;;  %3566 = vmatprep.subr.bf16.mxu0 %v4035_v55 }
 0x155   :  { %3556 = vmatpush3.bf16.xpose.msk.msra.mxu1 %vm3983_vm1, %v3551_v40  ;;  %3426 = vmatprep.mubr.msk.f32.mxu1 %vm96_vm0, %v304_v44  ;;  %v675_v57 = vpop.f32.mrb[23].mxu0 }
 0x156   :  { %3562 = vmatprep.subr.bf16.mxu1 %v3561_v52  ;;  %v4038_v58 = vpack.c.bf16 %v3360_v56, %v675_v57 }
 0x158   :  { %v3363_v59 = vpop.f32.mrb[24].mxu0 }
 0x159   :  { %v685_v60 = vpop.f32.mrb[25].mxu0 }
 0x15a   :  { %v4041_v61 = vpack.c.bf16 %v3363_v59, %v685_v60 }
 0x15c   :  { %3427 = vmatmul.mubr.msk.f32.vlgmr.msra.gmra.mrb[26].mxu1 %vm96_vm0, %v305_v46  ;;  %v3366_v62 = vpop.f32.mrb[26].mxu0 }
 0x15d   :  { %3564 = vmatpush3.bf16.msra.mxu1 %v3561_v52  ;;  %v695_v63 = vpop.f32.mrb[27].mxu0 }
 0x15e   :  { %3570 = vmatprep.subr.bf16.mxu1 %v4038_v58  ;;  %v4043_v0 = vpack.c.bf16 %v3366_v62, %v695_v63 }
 0x160   :  { %v3369_v1 = vpop.f32.mrb[28].mxu0 }
 0x161   :  { %v705_v2 = vpop.f32.mrb[29].mxu0 }
 0x162   :  { %v4045_v3 = vpack.c.bf16 %v3369_v1, %v705_v2 }
 0x164   :  { %v3372_v4 = vpop.f32.mrb[30].mxu0 }
 0x165   :  { %v715_v5 = vpop.f32.mrb[31].mxu0 }
 0x166   :  { %v4047_v6 = vpack.c.bf16 %v3372_v4, %v715_v5 }
 0x207   :  { %v3379_v7 = vpop.f32.mrb[16].mxu1 }
 0x208   :  { %v1437_v8 = vmul.f32 0.01, %v3379_v7  ;;  %v802_v9 = vpop.f32.mrb[17].mxu1  ;;  %vm1421_vm2 = vcmp.ge.f32.partialorder %v3379_v7, 0.0 }
 0x209   :  { %v1436_v10 = vmul.f32 0.01, %v802_v9  ;;  %vm1420_vm4 = vcmp.ge.f32.partialorder %v802_v9, 0.0 }
 0x20a   :  { %v4049_v11 = vsel %vm1421_vm2, %v3379_v7, %v1437_v8 }
 0x20b   :  { %v1472_v12 = vsel %vm1468_vm3, %v4049_v11, -inf  ;;  %v4053_v13 = vsel %vm1420_vm4, %v802_v9, %v1436_v10 }
 0x20c   :  { %1473 = vmax.xlane.f32.xlu1 %v1472_v12  ;;  %v1469_v14 = vsel %vm1468_vm3, %v4053_v13, -inf }
 0x20d   :  { %1470 = vmax.xlane.f32.xlu0 %v1469_v14 }
 0x20f   :  { %v3386_v15 = vpop.f32.mrb[18].mxu1 }
 0x210   :  { %vm1423_vm5 = vcmp.ge.f32.partialorder %v3386_v15, 0.0  ;;  %v1439_v16 = vmul.f32 0.01, %v3386_v15  ;;  %v889_v17 = vpop.f32.mrb[19].mxu1 }
 0x211   :  { %vm1422_vm6 = vcmp.ge.f32.partialorder %v889_v17, 0.0  ;;  %v1438_v18 = vmul.f32 0.01, %v889_v17 }
 0x212   :  { %v4057_v19 = vsel %vm1423_vm5, %v3386_v15, %v1439_v16 }
 0x213   :  { %v1478_v20 = vsel %vm1468_vm3, %v4057_v19, -inf  ;;  %v4061_v21 = vsel %vm1422_vm6, %v889_v17, %v1438_v18 }
 0x214   :  { %1479 = vmax.xlane.f32.xlu1 %v1478_v20  ;;  %v1475_v22 = vsel %vm1468_vm3, %v4061_v21, -inf }
 0x215   :  { %1476 = vmax.xlane.f32.xlu0 %v1475_v22 }
 0x217   :  { %v3393_v23 = vpop.f32.mrb[20].mxu1  ;;  %v3407_v24 = vpop.f32.mrb[32].mxu0 }
 0x218   :  { %vm1425_vm7 = vcmp.ge.f32.partialorder %v3393_v23, 0.0  ;;  %v1441_v25 = vmul.f32 0.01, %v3393_v23  ;;  %vm1429_vm8 = vcmp.ge.f32.partialorder %v3407_v24, 0.0  ;;  %v1445_v26 = vmul.f32 0.01, %v3407_v24 }
 0x219   :  { %v976_v27 = vpop.f32.mrb[21].mxu1  ;;  %v1150_v28 = vpop.f32.mrb[33].mxu0 }
 0x21a   :  { %v4065_v29 = vsel %vm1425_vm7, %v3393_v23, %v1441_v25  ;;  %v4067_v30 = vsel %vm1429_vm8, %v3407_v24, %v1445_v26  ;;  %v1440_v32 = vmul.f32 0.01, %v976_v27  ;;  %vm1424_vm9 = vcmp.ge.f32.partialorder %v976_v27, 0.0 }
 0x21b   :  { %v1484_v31 = vsel %vm1468_vm3, %v4065_v29, -inf  ;;  %v1496_v33 = vsel %vm1468_vm3, %v4067_v30, -inf  ;;  %v1444_v37 = vmul.f32 0.01, %v1150_v28  ;;  %vm1428_vm12 = vcmp.ge.f32.partialorder %v1150_v28, 0.0 }
 0x21c   :  { %1485 = vmax.xlane.f32.xlu0 %v1484_v31  ;;  %v4073_v38 = vsel %vm1424_vm9, %v976_v27, %v1440_v32 }
 0x21d   :  { %v1481_v44 = vsel %vm1468_vm3, %v4073_v38, -inf  ;;  %v4083_v47 = vsel %vm1428_vm12, %v1150_v28, %v1444_v37 }
 0x21e   :  { %v1493_v51 = vsel %vm1468_vm3, %v4083_v47, -inf }
 0x21f   :  { %v3400_v34 = vpop.f32.mrb[22].mxu1 }
 0x220   :  { %vm1427_vm10 = vcmp.ge.f32.partialorder %v3400_v34, 0.0  ;;  %v1443_v35 = vmul.f32 0.01, %v3400_v34  ;;  %1497 = vmax.xlane.f32.xlu0 %v1496_v33  ;;  %v1063_v36 = vpop.f32.mrb[23].mxu1 }
 0x221   :  { %vm1426_vm11 = vcmp.ge.f32.partialorder %v1063_v36, 0.0  ;;  %v1442_v39 = vmul.f32 0.01, %v1063_v36  ;;  %v3421_v40 = vpop.f32.mrb[34].mxu0 }
 0x222   :  { %v4075_v41 = vsel %vm1427_vm10, %v3400_v34, %v1443_v35  ;;  %v1324_v42 = vpop.f32.mrb[35].mxu0  ;;  %v1449_v52 = vmul.f32 0.01, %v3421_v40  ;;  %vm1433_vm15 = vcmp.ge.f32.partialorder %v3421_v40, 0.0 }
 0x223   :  { %v1490_v43 = vsel %vm1468_vm3, %v4075_v41, -inf  ;;  %vm1432_vm13 = vcmp.ge.f32.partialorder %v1324_v42, 0.0  ;;  %v1448_v45 = vmul.f32 0.01, %v1324_v42  ;;  %v4081_v46 = vsel %vm1426_vm11, %v1063_v36, %v1442_v39 }
 0x224   :  { %1491 = vmax.xlane.f32.xlu1 %v1490_v43  ;;  %1482 = vmax.xlane.f32.xlu0 %v1481_v44  ;;  %v1487_v50 = vsel %vm1468_vm3, %v4081_v46, -inf  ;;  %v4099_v63 = vsel %vm1433_vm15, %v3421_v40, %v1449_v52 }
 0x225   :  { %v4085_v48 = vsel %vm1432_vm13, %v1324_v42, %v1448_v45  ;;  %v1508_v4 = vsel %vm1468_vm3, %v4099_v63, -inf }
 0x226   :  { %v1505_v57 = vsel %vm1468_vm3, %v4085_v48, -inf }
 0x227   :  { %v3414_v49 = vpop.f32.mrb[24].mxu1 }
 0x228   :  { %vm1431_vm14 = vcmp.ge.f32.partialorder %v3414_v49, 0.0  ;;  %v1447_v53 = vmul.f32 0.01, %v3414_v49  ;;  %1488 = vmax.xlane.f32.xlu1 %v1487_v50  ;;  %1494 = vmax.xlane.f32.xlu0 %v1493_v51  ;;  %v1237_v54 = vpop.f32.mrb[25].mxu1 }
 0x229   :  { %vm1430_vm1 = vcmp.ge.f32.partialorder %v1237_v54, 0.0  ;;  %v1446_v56 = vmul.f32 0.01, %v1237_v54 }
 0x22a   :  { %v4093_v59 = vsel %vm1431_vm14, %v3414_v49, %v1447_v53 }
 0x22b   :  { %v1502_v60 = vsel %vm1468_vm3, %v4093_v59, -inf  ;;  %v4097_v62 = vsel %vm1430_vm1, %v1237_v54, %v1446_v56 }
 0x22c   :  { %1503 = vmax.xlane.f32.xlu1 %v1502_v60  ;;  %1506 = vmax.xlane.f32.xlu0 %v1505_v57  ;;  %v1499_v2 = vsel %vm1468_vm3, %v4097_v62, -inf }
 0x22f   :  { %v3428_v1 = vpop.f32.mrb[26].mxu1 }
 0x230   :  { %1500 = vmax.xlane.f32.xlu1 %v1499_v2  ;;  %1509 = vmax.xlane.f32.xlu0 %v1508_v4  ;;  %v1411_v5 = vpop.f32.mrb[27].mxu1  ;;  %v1451_v7 = vmul.f32 0.01, %v3428_v1  ;;  %vm1435_vm4 = vcmp.ge.f32.partialorder %v3428_v1, 0.0 }
 0x231   :  { %vm1434_vm2 = vcmp.ge.f32.partialorder %v1411_v5, 0.0  ;;  %v1450_v8 = vmul.f32 0.01, %v1411_v5 }
 0x232   :  { %v4109_v12 = vsel %vm1435_vm4, %v3428_v1, %v1451_v7 }
 0x233   :  { %v4105_v9 = vsel %vm1434_vm2, %v1411_v5, %v1450_v8  ;;  %v1514_v14 = vsel %vm1468_vm3, %v4109_v12, -inf }
 0x234   :  { %v1511_v10 = vsel %vm1468_vm3, %v4105_v9, -inf }
 0x235   :  { %1512 = vmax.xlane.f32.xlu1 %v1511_v10 }
 0x239   :  { %1515 = vmax.xlane.f32.xlu1 %v1514_v14 }
 0x299   :  { %v1474_v15 = vpop.xlane.xlu1 %1473 }
 0x29a   :  { %v1518_v16 = vsub.f32 %v4049_v11, %v1474_v15  ;;  %v1471_v17 = vpop.xlane.xlu0 %1470 }
 0x29b   :  { %v1517_v18 = vsub.f32 %v4053_v13, %v1471_v17 }
 0x29c   :  { %v1535_v20 = vmul.f32 1.442695, %v1518_v16 }
 0x29d   :  { %v1533_v22 = vmul.f32 1.442695, %v1517_v18 }
 0x29e   :  { %3606 = vpow2.f32 %v1535_v20 }
 0x29f   :  { %3608 = vpow2.f32 %v1533_v22 }
 0x2a1   :  { %v1480_v23 = vpop.xlane.xlu1 %1479 }
 0x2a2   :  { %v1520_v24 = vsub.f32 %v4057_v19, %v1480_v23  ;;  %v1477_v25 = vpop.xlane.xlu0 %1476 }
 0x2a3   :  { %v1519_v26 = vsub.f32 %v4061_v21, %v1477_v25 }
 0x2a4   :  { %v1539_v27 = vmul.f32 1.442695, %v1520_v24 }
 0x2a5   :  { %v1537_v28 = vmul.f32 1.442695, %v1519_v26 }
 0x2a6   :  { %3610 = vpow2.f32 %v1539_v27 }
 0x2a7   :  { %3612 = vpow2.f32 %v1537_v28 }
 0x2a8   :  { %v4117_v31 = vpop.eup %3606 }
 0x2a9   :  { %v1486_v11 = vpop.xlane.xlu0 %1485  ;;  %v1568_v13 = vsel %vm1468_vm3, %v4117_v31, 0.0  ;;  %v4121_v32 = vpop.eup %3608 }
 0x2aa   :  { %v1522_v33 = vsub.f32 %v4065_v29, %v1486_v11  ;;  %1569 = vadd.xlane.f32.xlu0 %v1568_v13  ;;  %v1565_v21 = vsel %vm1468_vm3, %v4121_v32, 0.0 }
 0x2ac   :  { %v1543_v34 = vmul.f32 1.442695, %v1522_v33 }
 0x2ad   :  { %v1498_v19 = vpop.xlane.xlu0 %1497 }
 0x2ae   :  { %3614 = vpow2.f32 %v1543_v34  ;;  %v1526_v35 = vsub.f32 %v4067_v30, %v1498_v19  ;;  %1566 = vadd.xlane.f32.xlu0 %v1565_v21 }
 0x2b0   :  { %v4127_v36 = vpop.eup %3610  ;;  %v1551_v37 = vmul.f32 1.442695, %v1526_v35 }
 0x2b1   :  { %v1492_v39 = vpop.xlane.xlu1 %1491  ;;  %v1483_v40 = vpop.xlane.xlu0 %1482  ;;  %v1574_v42 = vsel %vm1468_vm3, %v4127_v36, 0.0 }
 0x2b2   :  { %v4131_v43 = vpop.eup %3612  ;;  %3616 = vpow2.f32 %v1551_v37  ;;  %v1524_v29 = vsub.f32 %v4075_v41, %v1492_v39  ;;  %v1521_v44 = vsub.f32 %v4073_v38, %v1483_v40  ;;  %1575 = vadd.xlane.f32.xlu1 %v1574_v42 }
 0x2b3   :  { %v1571_v51 = vsel %vm1468_vm3, %v4131_v43, 0.0 }
 0x2b4   :  { %v1547_v45 = vmul.f32 1.442695, %v1524_v29  ;;  %v1541_v49 = vmul.f32 1.442695, %v1521_v44 }
 0x2b5   :  { %v1489_v30 = vpop.xlane.xlu1 %1488  ;;  %v1495_v50 = vpop.xlane.xlu0 %1494 }
 0x2b6   :  { %3618 = vpow2.f32 %v1547_v45  ;;  %v1523_v52 = vsub.f32 %v4081_v46, %v1489_v30  ;;  %v1525_v53 = vsub.f32 %v4083_v47, %v1495_v50  ;;  %1572 = vadd.xlane.f32.xlu1 %v1571_v51 }
 0x2b7   :  { %3620 = vpow2.f32 %v1541_v49 }
 0x2b8   :  { %v4139_v54 = vpop.eup %3614  ;;  %v1545_v41 = vmul.f32 1.442695, %v1523_v52  ;;  %v1549_v56 = vmul.f32 1.442695, %v1525_v53 }
 0x2b9   :  { %v1504_v38 = vpop.xlane.xlu1 %1503  ;;  %v1507_v57 = vpop.xlane.xlu0 %1506  ;;  %v1580_v60 = vsel %vm1468_vm3, %v4139_v54, 0.0 }
 0x2ba   :  { %3622 = vpow2.f32 %v1545_v41  ;;  %v1528_v1 = vsub.f32 %v4093_v59, %v1504_v38  ;;  %v1529_v2 = vsub.f32 %v4085_v48, %v1507_v57  ;;  %1581 = vadd.xlane.f32.xlu0 %v1580_v60 }
 0x2bb   :  { %3624 = vpow2.f32 %v1549_v56 }
 0x2bc   :  { %v4145_v46 = vpop.eup %3616  ;;  %v1555_v47 = vmul.f32 1.442695, %v1528_v1  ;;  %v1557_v4 = vmul.f32 1.442695, %v1529_v2 }
 0x2bd   :  { %v1501_v5 = vpop.xlane.xlu1 %1500  ;;  %v1510_v7 = vpop.xlane.xlu0 %1509  ;;  %v1592_v8 = vsel %vm1468_vm3, %v4145_v46, 0.0 }
 0x2be   :  { %3626 = vpow2.f32 %v1555_v47  ;;  %v1527_v10 = vsub.f32 %v4097_v62, %v1501_v5  ;;  %v1530_v14 = vsub.f32 %v4099_v63, %v1510_v7  ;;  %1593 = vadd.xlane.f32.xlu0 %v1592_v8 }
 0x2bf   :  { %3628 = vpow2.f32 %v1557_v4 }
 0x2c0   :  { %v4151_v59 = vpop.eup %3618  ;;  %v1553_v48 = vmul.f32 1.442695, %v1527_v10  ;;  %v1559_v15 = vmul.f32 1.442695, %v1530_v14 }
 0x2c1   :  { %v4153_v16 = vpop.eup %3620  ;;  %v1586_v17 = vsel %vm1468_vm3, %v4151_v59, 0.0 }
 0x2c2   :  { %3630 = vpow2.f32 %v1553_v48  ;;  %v1577_v18 = vsel %vm1468_vm3, %v4153_v16, 0.0  ;;  %1587 = vadd.xlane.f32.xlu1 %v1586_v17  ;;  %v1513_v20 = vpop.xlane.xlu1 %1512 }
 0x2c3   :  { %3632 = vpow2.f32 %v1559_v15  ;;  %1578 = vadd.xlane.f32.xlu0 %v1577_v18  ;;  %v1531_v62 = vsub.f32 %v4105_v9, %v1513_v20  ;;  %v3818_v18 = vmov 1983009808  }
 0x2c4   :  { %v4160_v63 = vpop.eup %3622  ;;  %v2344_v20 = vunpack.c.l.s4 %v3818_v18 }
 0x2c5   :  { %v4162_v22 = vpop.eup %3624  ;;  %v1561_v23 = vmul.f32 1.442695, %v1531_v62  ;;  %v1583_v24 = vsel %vm1468_vm3, %v4160_v63, 0.0  ;;  %v2346_v62 = vlaneseq }
 0x2c6   :  { %v1589_v25 = vsel %vm1468_vm3, %v4162_v22, 0.0  ;;  %1584 = vadd.xlane.f32.xlu1 %v1583_v24  ;;  %v1516_v26 = vpop.xlane.xlu1 %1515 }
 0x2c7   :  { %3634 = vpow2.f32 %v1561_v23  ;;  %1590 = vadd.xlane.f32.xlu0 %v1589_v25  ;;  %v1532_v27 = vsub.f32 %v4109_v12, %v1516_v26  ;;  %v2347_v23 = vshrl.u32 %v2346_v62, 7  ;;  %v3819_v25 = vmov 1934713408  }
 0x2c8   :  { %v4169_v28 = vpop.eup %3626  ;;  %v2408_v26 = vunpack.c.l.s4 %v3819_v25 }
 0x2c9   :  { %v4171_v9 = vpop.eup %3628  ;;  %v1563_v11 = vmul.f32 1.442695, %v1532_v27  ;;  %v1598_v13 = vsel %vm1468_vm3, %v4169_v28, 0.0 }
 0x2ca   :  { %v1601_v33 = vsel %vm1468_vm3, %v4171_v9, 0.0  ;;  %1599 = vadd.xlane.f32.xlu1 %v1598_v13 }
 0x2cb   :  { %3636 = vpow2.f32 %v1563_v11  ;;  %1602 = vadd.xlane.f32.xlu0 %v1601_v33 }
 0x2cc   :  { %v4177_v34 = vpop.eup %3630 }
 0x2cd   :  { %v4179_v19 = vpop.eup %3632  ;;  %v1595_v12 = vsel %vm1468_vm3, %v4177_v34, 0.0 }
 0x2ce   :  { %v1604_v21 = vsel %vm1468_vm3, %v4179_v19, 0.0  ;;  %1596 = vadd.xlane.f32.xlu1 %v1595_v12 }
 0x2cf   :  { %1605 = vadd.xlane.f32.xlu0 %v1604_v21 }
 0x2d1   :  { %v4185_v35 = vpop.eup %3634 }
 0x2d2   :  { %v1607_v37 = vsel %vm1468_vm3, %v4185_v35, 0.0 }
 0x2d3   :  { %1608 = vadd.xlane.f32.xlu1 %v1607_v37 }
 0x2d5   :  { %v4189_v39 = vpop.eup %3636 }
 0x2d6   :  { %v1610_v40 = vsel %vm1468_vm3, %v4189_v39, 0.0 }
 0x2d7   :  { %1611 = vadd.xlane.f32.xlu1 %v1610_v40 }
 0x337   :  { %v1570_v42 = vpop.xlane.xlu0 %1569 }
 0x338   :  { %3638 = vrcp.f32 %v1570_v42 }
 0x33b   :  { %v1567_v29 = vpop.xlane.xlu0 %1566 }
 0x33c   :  { %3640 = vrcp.f32 %v1567_v29 }
 0x33f   :  { %v1576_v44 = vpop.xlane.xlu1 %1575 }
 0x340   :  { %3642 = vrcp.f32 %v1576_v44 }
 0x342   :  { %v3639_v49 = vpop.eup %3638 }
 0x343   :  { %v1573_v45 = vpop.xlane.xlu1 %1572  ;;  %v4197_v52 = vmul.f32 %v3639_v49, %v4117_v31 }
 0x344   :  { %3644 = vrcp.f32 %v1573_v45 }
 0x346   :  { %v3641_v30 = vpop.eup %3640 }
 0x347   :  { %v1582_v50 = vpop.xlane.xlu0 %1581  ;;  %v4194_v51 = vmul.f32 %v3641_v30, %v4121_v32 }
 0x348   :  { %3646 = vrcp.f32 %v1582_v50 }
 0x349   :  { %3433 = vmatprep.mubr.msk.f32.mxu0 %vm1468_vm3, %v4194_v51 }
 0x34a   :  { %3434 = vmatmul.mubr.msk.f32.vlgmr.msra.gmra.mrb[36].mxu0 %vm1468_vm3, %v4197_v52  ;;  %v3643_v41 = vpop.eup %3642 }
 0x34b   :  { %3568 = vmatpush3.bf16.msra.mxu0 %v4035_v55  ;;  %v1594_v53 = vpop.xlane.xlu0 %1593  ;;  %v4209_v31 = vmul.f32 %v3643_v41, %v4127_v36 }
 0x34c   :  { %3574 = vmatprep.subr.bf16.mxu0 %v4041_v61 }
 0x34e   :  { %v3645_v56 = vpop.eup %3644 }
 0x34f   :  { %v1588_v38 = vpop.xlane.xlu1 %1587  ;;  %v4206_v32 = vmul.f32 %v3645_v56, %v4131_v43 }
 0x350   :  { %v1579_v57 = vpop.xlane.xlu0 %1578 }
 0x351   :  { %3648 = vrcp.f32 %v1579_v57  ;;  %3440 = vmatprep.mubr.msk.f32.mxu1 %vm1468_vm3, %v4206_v32 }
 0x352   :  { %3650 = vrcp.f32 %v1594_v53  ;;  %3441 = vmatmul.mubr.msk.f32.vlgmr.msra.gmra.mrb[28].mxu1 %vm1468_vm3, %v4209_v31  ;;  %v3647_v1 = vpop.eup %3646 }
 0x353   :  { %3652 = vrcp.f32 %v1588_v38  ;;  %3572 = vmatpush3.bf16.msra.mxu1 %v4038_v58  ;;  %v1585_v55 = vpop.xlane.xlu1 %1584  ;;  %v4221_v8 = vmul.f32 %v3647_v1, %v4139_v54 }
 0x354   :  { %v1591_v60 = vpop.xlane.xlu0 %1590  ;;  %3578 = vmatprep.subr.bf16.mxu1 %v4043_v0  ;;  %3654 = vrcp.f32 %v1585_v55 }
 0x355   :  { %3656 = vrcp.f32 %v1591_v60  ;;  %v2816_v29 = vcombine.high %v4197_v52, %v4221_v8 }
 0x357   :  { %v1600_v36 = vpop.xlane.xlu1 %1599 }
 0x358   :  { %v1603_v43 = vpop.xlane.xlu0 %1602 }
 0x359   :  { %3658 = vrcp.f32 %v1603_v43 }
 0x35a   :  { %3660 = vrcp.f32 %v1600_v36 }
 0x35b   :  { %v3649_v2 = vpop.eup %3648  ;;  %v1597_v47 = vpop.xlane.xlu1 %1596 }
 0x35c   :  { %v3651_v4 = vpop.eup %3650  ;;  %v1606_v5 = vpop.xlane.xlu0 %1605  ;;  %3662 = vrcp.f32 %v1597_v47  ;;  %v4218_v7 = vmul.f32 %v3649_v2, %v4153_v16 }
 0x35d   :  { %v3653_v58 = vpop.eup %3652  ;;  %3664 = vrcp.f32 %v1606_v5  ;;  %v4236_v17 = vmul.f32 %v3651_v4, %v4145_v46 }
 0x35e   :  { %v3655_v10 = vpop.eup %3654  ;;  %3447 = vmatprep.mubr.msk.f32.mxu0 %vm1468_vm3, %v4218_v7  ;;  %v1636_v15 = vmul.f32 %v3653_v58, %v4151_v59  ;;  %v2679_v33 = vcombine.low %v4194_v51, %v4218_v7  ;;  %v2680_v45 = vcombine.high %v4194_v51, %v4218_v7 }
 0x35f   :  { %v3657_v14 = vpop.eup %3656  ;;  %3448 = vmatmul.mubr.msk.f32.vlgmr.msra.gmra.mrb[38].mxu0 %vm1468_vm3, %v4221_v8  ;;  %v4228_v48 = vmul.f32 %v3655_v10, %v4160_v63 }
 0x360   :  { %3576 = vmatpush3.bf16.msra.mxu0 %v4041_v61  ;;  %v1609_v16 = vpop.xlane.xlu1 %1608  ;;  %v4233_v54 = vmul.f32 %v3657_v14, %v4162_v22  ;;  %v2345_v22 = vunpack.c.0.s8 %v2344_v20  ;;  %v2831_v12 = vcombine.low %v4209_v31, %v1636_v15  ;;  %v2832_v21 = vcombine.high %v4209_v31, %v1636_v15 }
 0x361   :  { %3582 = vmatprep.subr.bf16.mxu0 %v4045_v3  ;;  %3666 = vrcp.f32 %v1609_v16  ;;  %3454 = vmatprep.mubr.msk.f32.mxu1 %vm1468_vm3, %v4228_v48  ;;  %v2696_v42 = vcombine.high %v4206_v32, %v4228_v48 }
 0x362   :  { %3461 = vmatprep.mubr.msk.f32.mxu0 %vm1468_vm3, %v4233_v54  ;;  %3455 = vmatmul.mubr.msk.f32.vlgmr.msra.gmra.mrb[30].mxu1 %vm1468_vm3, %v1636_v15 }
 0x363   :  { %v3659_v61 = vpop.eup %3658  ;;  %3462 = vmatmul.mubr.msk.f32.vlgmr.msra.gmra.mrb[40].mxu0 %vm1468_vm3, %v4236_v17  ;;  %3580 = vmatpush3.bf16.msra.mxu1 %v4043_v0  ;;  %v2695_v0 = vcombine.low %v4206_v32, %v4228_v48 }
 0x364   :  { %3584 = vmatpush3.bf16.msra.mxu0 %v4045_v3  ;;  %3586 = vmatprep.subr.bf16.mxu1 %v4047_v6  ;;  %v1612_v46 = vpop.xlane.xlu1 %1611  ;;  %v1641_v59 = vmul.f32 %v3659_v61, %v4171_v9  ;;  %v3661_v63 = vpop.eup %3660  ;;  %v4257_v9 = vsub.s32 %v2345_v22, %v2347_v23 }
 0x365   :  { %3668 = vrcp.f32 %v1612_v46  ;;  %v1640_v3 = vmul.f32 %v3661_v63, %v4169_v28  ;;  %v2815_v28 = vcombine.low %v4197_v52, %v4221_v8 }
 0x366   :  { %v3663_v24 = vpop.eup %3662  ;;  %3475 = vmatprep.mubr.msk.f32.mxu0 %vm1468_vm3, %v1641_v59  ;;  %v2703_v37 = vrot.slane %v2695_v0, %v4257_v9  ;;  %v2711_v40 = vcombine.low %v4233_v54, %v1641_v59  ;;  %v2687_v49 = vrot.slane %v2679_v33, %v4257_v9  ;;  %v4279_v30 = vrot.slane %v2831_v12, %v4257_v9 }
 0x367   :  { %v3665_v27 = vpop.eup %3664  ;;  %v1639_v11 = vmul.f32 %v3663_v24, %v4177_v34  ;;  %v2409_v34 = vunpack.c.0.s8 %v2408_v26  ;;  %v4283_v50 = vrot.slane %v2832_v21, %v4257_v9  ;;  %v2710_v32 = vrot.slane %v2696_v42, %v4257_v9 }
 0x368   :  { %v1642_v13 = vmul.f32 %v3665_v27, %v4179_v19  ;;  %v2719_v51 = vrot.slane %v2711_v40, %v4257_v9  ;;  %v2743_v38 = vcombine.low %v2687_v49, %v2703_v37  ;;  %v4292_v31 = vrot.slane %v2816_v29, %v4257_v9 }
 0x369   :  { %3468 = vmatprep.mubr.msk.f32.mxu1 %vm1468_vm3, %v1639_v11  ;;  %v4286_v53 = vsub.s32 %v2409_v34, %v2347_v23  ;;  %v2694_v1 = vrot.slane %v2680_v45, %v4257_v9  ;;  %v2744_v58 = vcombine.high %v2687_v49, %v2703_v37 }
 0x36a   :  { %3476 = vmatmul.mubr.msk.f32.vlgmr.msra.gmra.mrb[42].mxu0 %vm1468_vm3, %v1642_v13  ;;  %3469 = vmatmul.mubr.msk.f32.vlgmr.msra.gmra.mrb[32].mxu1 %vm1468_vm3, %v1640_v3  ;;  %v2847_v60 = vcombine.low %v4236_v17, %v1642_v13  ;;  %v2896_v47 = vcombine.high %v4292_v31, %v4283_v50  ;;  %v2848_v7 = vcombine.high %v4236_v17, %v1642_v13 }
 0x36b   :  { %v3667_v19 = vpop.eup %3666  ;;  %3588 = vmatpush3.bf16.msra.mxu1 %v4047_v6  ;;  %v2712_v6 = vcombine.high %v4233_v54, %v1641_v59  ;;  %v2760_v8 = vcombine.high %v2694_v1, %v2710_v32  ;;  %v4306_v48 = vrot.slane %v2743_v38, %v4286_v53  ;;  %v2758_v22 = vrot.slane %v2744_v58, %v4286_v53 }
 0x36c   :  { %v1643_v44 = vmul.f32 %v3667_v19, %v4185_v35  ;;  %v2823_v35 = vrot.slane %v2815_v28, %v4257_v9  ;;  %v2855_v16 = vrot.slane %v2847_v60, %v4257_v9  ;;  %v2862_v63 = vrot.slane %v2848_v7, %v4257_v9 }
 0x36d   :  { %v2726_v2 = vrot.slane %v2712_v6, %v4257_v9  ;;  %v4327_v25 = vrot.slane %v2760_v8, %v4286_v53  ;;  %v2759_v27 = vcombine.low %v2694_v1, %v2710_v32  ;;  %v4336_v33 = vrot.slane %v2896_v47, %v4286_v53 }
 0x36e   :  { %3482 = vmatprep.mubr.msk.f32.mxu1 %vm1468_vm3, %v1643_v44  ;;  %v2727_v52 = vcombine.low %v1639_v11, %v1643_v44  ;;  %v2728_v41 = vcombine.high %v1639_v11, %v1643_v44  ;;  %v2879_v43 = vcombine.low %v2823_v35, %v4279_v30  ;;  %v2880_v59 = vcombine.high %v2823_v35, %v4279_v30 }
 0x36f   :  { %v3669_v56 = vpop.eup %3668  ;;  %v2767_v37 = vrot.slane %v2759_v27, %v4286_v53  ;;  %v2895_v49 = vcombine.low %v4292_v31, %v4283_v50 }
 0x370   :  { %v1644_v57 = vmul.f32 %v3669_v56, %v4189_v39  ;;  %v2735_v55 = vrot.slane %v2727_v52, %v4257_v9  ;;  %v2742_v36 = vrot.slane %v2728_v41, %v4257_v9  ;;  %v4324_v23 = vrot.slane %v2879_v43, %v4286_v53 }
 0x371   :  { %v2894_v40 = vrot.slane %v2880_v59, %v4286_v53  ;;  %v2903_v35 = vrot.slane %v2895_v49, %v4286_v53 }
 0x372   :  { %3483 = vmatmul.mubr.msk.f32.vlgmr.msra.gmra.mrb[34].mxu1 %vm1468_vm3, %v1644_v57  ;;  %v2775_v4 = vcombine.low %v2719_v51, %v2735_v55  ;;  %v2776_v5 = vcombine.high %v2719_v51, %v2735_v55  ;;  %v2863_v39 = vcombine.low %v1640_v3, %v1644_v57  ;;  %v2792_v10 = vcombine.high %v2726_v2, %v2742_v36 }
 0x373   :  { %v2864_v14 = vcombine.high %v1640_v3, %v1644_v57  ;;  %v2791_v20 = vcombine.low %v2726_v2, %v2742_v36 }
 0x374   :  { %v4309_v15 = vrot.slane %v2775_v4, %v4286_v53  ;;  %v2871_v54 = vrot.slane %v2863_v39, %v4257_v9  ;;  %v2790_v18 = vrot.slane %v2776_v5, %v4286_v53  ;;  %v4315_v62 = vrot.slane %v2792_v10, %v4286_v53 }
 0x375   :  { %v2878_v17 = vrot.slane %v2864_v14, %v4257_v9  ;;  %v2799_v13 = vrot.slane %v2791_v20, %v4286_v53 }
 0x376   :  { %v2808_v61 = vcombine.high %v4306_v48, %v4309_v15  ;;  %v2911_v46 = vcombine.low %v2855_v16, %v2871_v54  ;;  %v2912_v24 = vcombine.high %v2855_v16, %v2871_v54  ;;  %v2807_v0 = vcombine.low %v4306_v48, %v4309_v15 }
 0x377   :  { %v2928_v11 = vcombine.high %v2862_v63, %v2878_v17  ;;  %v2810_v3 = vcombine.high %v2758_v22, %v2790_v18  ;;  %v2814_v12 = vcombine.high %v4327_v25, %v4315_v62  ;;  %v2811_v29 = vcombine.low %v2767_v37, %v2799_v13 }
 0x378   :  { %2952 = vrot.lane.b32.xlu0 %v2808_v61, %s3820_s3  ;;  %v4330_v26 = vrot.slane %v2911_v46, %v4286_v53  ;;  %v2926_v34 = vrot.slane %v2912_v24, %v4286_v53  ;;  %v2927_v45 = vcombine.low %v2862_v63, %v2878_v17  ;;  %v2812_v30 = vcombine.high %v2767_v37, %v2799_v13 }
 0x379   :  { %v4344_v28 = vrot.slane %v2928_v11, %v4286_v53  ;;  %v2813_v41 = vcombine.low %v4327_v25, %v4315_v62  ;;  %v2809_v38 = vcombine.low %v2758_v22, %v2790_v18 }
 0x37a   :  { %v2944_v21 = vcombine.high %v4324_v23, %v4330_v26  ;;  %v2943_v19 = vcombine.low %v4324_v23, %v4330_v26  ;;  %v2945_v44 = vcombine.low %v2894_v40, %v2926_v34  ;;  %v2946_v6 = vcombine.high %v2894_v40, %v2926_v34 }
 0x37b   :  { %v2950_v42 = vcombine.high %v4336_v33, %v4344_v28  ;;  %v2935_v52 = vrot.slane %v2927_v45, %v4286_v53  ;;  %v2949_v50 = vcombine.low %v4336_v33, %v4344_v28 }
 0x37c   :  { %2960 = vrot.lane.b32.xlu0 %v2810_v3, %s3821_s30  ;;  %2980 = vrot.lane.b32.xlu1 %v2944_v21, %s3820_s3 }
 0x37d   :  { %v2947_v56 = vcombine.low %v2903_v35, %v2935_v52  ;;  %v2948_v51 = vcombine.high %v2903_v35, %v2935_v52 }
 0x380   :  { %2964 = vrot.lane.b32.xlu0 %v2811_v29, %s3822_s6  ;;  %2984 = vrot.lane.b32.xlu1 %v2945_v44, %s3823_s1 }
 0x384   :  { %2968 = vrot.lane.b32.xlu0 %v2812_v30, %s3824_s17  ;;  %2988 = vrot.lane.b32.xlu1 %v2946_v6, %s3821_s30 }
 0x388   :  { %2972 = vrot.lane.b32.xlu0 %v2813_v41, %s3825_s18  ;;  %2992 = vrot.lane.b32.xlu1 %v2947_v56, %s3822_s6 }
 0x38c   :  { %2996 = vrot.lane.b32.xlu1 %v2948_v51, %s3824_s17 }
 0x390   :  { %3000 = vrot.lane.b32.xlu1 %v2949_v50, %s3825_s18 }
 0x394   :  { %2956 = vrot.lane.b32.xlu1 %v2809_v38, %s3823_s1 }
 0x41d   :  { %v3435_v32 = vpop.f32.mrb[36].mxu0 }
 0x41e   :  { %v1717_v31 = vpop.f32.mrb[37].mxu0  ;;  %v2310_v60 = vmul.f32 0.01, %v3435_v32  ;;  %vm2294_vm5 = vcmp.ge.f32.partialorder %v3435_v32, 0.0 }
 0x41f   :  { %v2309_v36 = vmul.f32 0.01, %v1717_v31  ;;  %vm2293_vm6 = vcmp.ge.f32.partialorder %v1717_v31, 0.0 }
 0x420   :  { %v2326_v47 = vsel %vm2294_vm5, %v3435_v32, %v2310_v60 }
 0x421   :  { %v2325_v5 = vsel %vm2293_vm6, %v1717_v31, %v2309_v36 }
 0x425   :  { %v3442_v57 = vpop.f32.mrb[28].mxu1 }
 0x426   :  { %v1798_v55 = vpop.f32.mrb[29].mxu1  ;;  %vm2296_vm9 = vcmp.ge.f32.partialorder %v3442_v57, 0.0  ;;  %v2312_v39 = vmul.f32 0.01, %v3442_v57 }
 0x427   :  { %v2311_v18 = vmul.f32 0.01, %v1798_v55  ;;  %vm2295_vm11 = vcmp.ge.f32.partialorder %v1798_v55, 0.0 }
 0x428   :  { %v2328_v59 = vsel %vm2296_vm9, %v3442_v57, %v2312_v39  ;;  %vm3009_vm9 = vcmask 392192  }
 0x429   :  { %v2327_v3 = vsel %vm2295_vm11, %v1798_v55, %v2311_v18 }
 0x432   :  { %v3449_v43 = vpop.f32.mrb[38].mxu0 }
 0x433   :  { %vm2298_vm7 = vcmp.ge.f32.partialorder %v3449_v43, 0.0  ;;  %v2314_v1 = vmul.f32 0.01, %v3449_v43  ;;  %v1879_v2 = vpop.f32.mrb[39].mxu0 }
 0x434   :  { %vm2297_vm8 = vcmp.ge.f32.partialorder %v1879_v2, 0.0  ;;  %v2313_v4 = vmul.f32 0.01, %v1879_v2 }
 0x435   :  { %v2330_v7 = vsel %vm2298_vm7, %v3449_v43, %v2314_v1  ;;  %v3456_v58 = vpop.f32.mrb[30].mxu1  ;;  %vm2662_vm7 = vcmask 523264  }
 0x436   :  { %v2477_v8 = vcombine.low %v2326_v47, %v2330_v7  ;;  %v2478_v10 = vcombine.high %v2326_v47, %v2330_v7  ;;  %v2329_v14 = vsel %vm2297_vm8, %v1879_v2, %v2313_v4  ;;  %vm2300_vm10 = vcmp.ge.f32.partialorder %v3456_v58, 0.0  ;;  %v3463_v16 = vpop.f32.mrb[40].mxu0  ;;  %v1960_v54 = vpop.f32.mrb[31].mxu1 }
 0x437   :  { %v2341_v20 = vcombine.low %v2325_v5, %v2329_v14  ;;  %v2342_v17 = vcombine.high %v2325_v5, %v2329_v14  ;;  %v2316_v61 = vmul.f32 0.01, %v3456_v58  ;;  %v2041_v46 = vpop.f32.mrb[41].mxu0  ;;  %vm2299_vm12 = vcmp.ge.f32.partialorder %v1960_v54, 0.0 }
 0x438   :  { %v2315_v22 = vmul.f32 0.01, %v1960_v54  ;;  %v2318_v11 = vmul.f32 0.01, %v3463_v16  ;;  %vm2302_vm13 = vcmp.ge.f32.partialorder %v3463_v16, 0.0  ;;  %vm2301_vm14 = vcmp.ge.f32.partialorder %v2041_v46, 0.0 }
 0x439   :  { %v2332_v63 = vsel %vm2300_vm10, %v3456_v58, %v2316_v61  ;;  %v2317_v21 = vmul.f32 0.01, %v2041_v46  ;;  %v2485_v29 = vrot.slane %v2477_v8, %v4257_v9  ;;  %v2492_v44 = vrot.slane %v2478_v10, %v4257_v9 }
 0x43a   :  { %v2493_v24 = vcombine.low %v2328_v59, %v2332_v63  ;;  %v2494_v27 = vcombine.high %v2328_v59, %v2332_v63  ;;  %v2331_v13 = vsel %vm2299_vm12, %v1960_v54, %v2315_v22  ;;  %v2356_v30 = vrot.slane %v2342_v17, %v4257_v9 }
 0x43b   :  { %v2357_v37 = vcombine.low %v2327_v3, %v2331_v13  ;;  %v2358_v40 = vcombine.high %v2327_v3, %v2331_v13  ;;  %v2334_v6 = vsel %vm2302_vm13, %v3463_v16, %v2318_v11  ;;  %v2333_v51 = vsel %vm2301_vm14, %v2041_v46, %v2317_v21 }
 0x43c   :  { %v2508_v34 = vrot.slane %v2494_v27, %v4257_v9  ;;  %v2501_v56 = vrot.slane %v2493_v24, %v4257_v9  ;;  %v2349_v4 = vrot.slane %v2341_v20, %v4257_v9  ;;  %vm2664_vm8 = vcmask 785408  }
 0x43d   :  { %v3477_v45 = vpop.f32.mrb[42].mxu0  ;;  %v3470_v49 = vpop.f32.mrb[32].mxu1  ;;  %v2365_v38 = vrot.slane %v2357_v37, %v4257_v9  ;;  %v2372_v32 = vrot.slane %v2358_v40, %v4257_v9  ;;  %vm3012_vm10 = vcmask 654336  }
 0x43e   :  { %vm2306_vm15 = vcmp.ge.f32.partialorder %v3477_v45, 0.0  ;;  %v2322_v52 = vmul.f32 0.01, %v3477_v45  ;;  %v2203_v35 = vpop.f32.mrb[43].mxu0  ;;  %v2122_v41 = vpop.f32.mrb[33].mxu1  ;;  %v2557_v57 = vcombine.low %v2492_v44, %v2508_v34  ;;  %vm2304_vm2 = vcmp.ge.f32.partialorder %v3470_v49, 0.0 }
 0x43f   :  { %vm2305_vm1 = vcmp.ge.f32.partialorder %v2203_v35, 0.0  ;;  %v2321_v50 = vmul.f32 0.01, %v2203_v35  ;;  %v2320_v36 = vmul.f32 0.01, %v3470_v49  ;;  %vm2303_vm4 = vcmp.ge.f32.partialorder %v2122_v41, 0.0 }
 0x440   :  { %v2338_v31 = vsel %vm2306_vm15, %v3477_v45, %v2322_v52  ;;  %v2319_v47 = vmul.f32 0.01, %v2122_v41  ;;  %v2541_v5 = vcombine.low %v2485_v29, %v2501_v56  ;;  %v2558_v39 = vcombine.high %v2492_v44, %v2508_v34 }
 0x441   :  { %v2509_v55 = vcombine.low %v2334_v6, %v2338_v31  ;;  %v2510_v60 = vcombine.high %v2334_v6, %v2338_v31  ;;  %v2337_v43 = vsel %vm2305_vm1, %v2203_v35, %v2321_v50  ;;  %v2542_v7 = vcombine.high %v2485_v29, %v2501_v56 }
 0x442   :  { %v2373_v1 = vcombine.low %v2333_v51, %v2337_v43  ;;  %v2374_v2 = vcombine.high %v2333_v51, %v2337_v43  ;;  %v2421_v58 = vcombine.low %v2356_v30, %v2372_v32  ;;  %v2336_v8 = vsel %vm2304_vm2, %v3470_v49, %v2320_v36 }
 0x443   :  { %v2405_v14 = vcombine.low %v2349_v4, %v2365_v38  ;;  %v2422_v16 = vcombine.high %v2356_v30, %v2372_v32  ;;  %v2335_v54 = vsel %vm2303_vm4, %v2122_v41, %v2319_v47  ;;  %v4376_v61 = vrot.slane %v2557_v57, %v4286_v53 }
 0x444   :  { %v2517_v46 = vrot.slane %v2509_v55, %v4257_v9  ;;  %v2524_v20 = vrot.slane %v2510_v60, %v4257_v9  ;;  %v2381_v63 = vrot.slane %v2373_v1, %v4257_v9  ;;  %v2388_v22 = vrot.slane %v2374_v2, %v4257_v9 }
 0x445   :  { %v3484_v10 = vpop.f32.mrb[34].mxu1  ;;  %v2406_v27 = vcombine.high %v2349_v4, %v2365_v38  ;;  %v4383_v21 = vrot.slane %v2541_v5, %v4286_v53  ;;  %v2572_v40 = vrot.slane %v2558_v39, %v4286_v53  ;;  %v2556_v29 = vrot.slane %v2542_v7, %v4286_v53 }
 0x446   :  { %vm2308_vm5 = vcmp.ge.f32.partialorder %v3484_v10, 0.0  ;;  %v2324_v18 = vmul.f32 0.01, %v3484_v10  ;;  %v2284_v17 = vpop.f32.mrb[35].mxu1  ;;  %v4390_v49 = vrot.slane %v2421_v58, %v4286_v53  ;;  %v4393_v30 = vrot.slane %v2405_v14, %v4286_v53 }
 0x447   :  { %vm2307_vm6 = vcmp.ge.f32.partialorder %v2284_v17, 0.0  ;;  %v2323_v59 = vmul.f32 0.01, %v2284_v17  ;;  %v2436_v35 = vrot.slane %v2422_v16, %v4286_v53  ;;  %v2420_v41 = vrot.slane %v2406_v27, %v4286_v53 }
 0x448   :  { %v2340_v24 = vsel %vm2308_vm5, %v3484_v10, %v2324_v18 }
 0x449   :  { %v2525_v11 = vcombine.low %v2336_v8, %v2340_v24  ;;  %v2526_v3 = vcombine.high %v2336_v8, %v2340_v24  ;;  %v2339_v13 = vsel %vm2307_vm6, %v2284_v17, %v2323_v59  ;;  %v2953_v24 = vpop.permute.xlu0 %2952 }
 0x44a   :  { %v2389_v34 = vcombine.low %v2335_v54, %v2339_v13  ;;  %v2390_v37 = vcombine.high %v2335_v54, %v2339_v13 }
 0x44b   :  { %v2533_v44 = vrot.slane %v2525_v11, %v4257_v9  ;;  %v2540_v45 = vrot.slane %v2526_v3, %v4257_v9 }
 0x44c   :  { %v2397_v6 = vrot.slane %v2389_v34, %v4257_v9  ;;  %v2404_v52 = vrot.slane %v2390_v37, %v4257_v9 }
 0x44d   :  { %v2589_v56 = vcombine.low %v2524_v20, %v2540_v45  ;;  %v2573_v51 = vcombine.low %v2517_v46, %v2533_v44  ;;  %v2590_v50 = vcombine.high %v2524_v20, %v2540_v45  ;;  %v2574_v38 = vcombine.high %v2517_v46, %v2533_v44  ;;  %v2961_v11 = vpop.permute.xlu0 %2960 }
 0x44e   :  { %v2437_v32 = vcombine.low %v2381_v63, %v2397_v6  ;;  %v2438_v31 = vcombine.high %v2381_v63, %v2397_v6  ;;  %v2453_v57 = vcombine.low %v2388_v22, %v2404_v52  ;;  %v2454_v55 = vcombine.high %v2388_v22, %v2404_v52 }
 0x44f   :  { %v2597_v60 = vrot.slane %v2589_v56, %v4286_v53  ;;  %v2581_v36 = vrot.slane %v2573_v51, %v4286_v53  ;;  %v2604_v43 = vrot.slane %v2590_v50, %v4286_v53  ;;  %v2588_v9 = vrot.slane %v2574_v38, %v4286_v53 }
 0x450   :  { %v4404_v1 = vrot.slane %v2453_v57, %v4286_v53  ;;  %v4407_v2 = vrot.slane %v2437_v32, %v4286_v53  ;;  %v2468_v47 = vrot.slane %v2454_v55, %v4286_v53  ;;  %v2452_v4 = vrot.slane %v2438_v31, %v4286_v53 }
 0x451   :  { %v2610_v5 = vcombine.high %v4376_v61, %v2597_v60  ;;  %v2606_v39 = vcombine.high %v4383_v21, %v2581_v36  ;;  %v2611_v7 = vcombine.low %v2572_v40, %v2604_v43  ;;  %v2607_v58 = vcombine.low %v2556_v29, %v2588_v9  ;;  %v2965_v13 = vpop.permute.xlu0 %2964 }
 0x452   :  { %v2612_v8 = vcombine.high %v2572_v40, %v2604_v43  ;;  %v2608_v10 = vcombine.high %v2556_v29, %v2588_v9  ;;  %v2474_v14 = vcombine.high %v4390_v49, %v4404_v1  ;;  %v2470_v16 = vcombine.high %v4393_v30, %v4407_v2 }
 0x453   :  { %2650 = vrot.lane.b32.xlu1 %v2610_v5, %s3823_s1  ;;  %2638 = vrot.lane.b32.xlu0 %v2606_v39, %s3823_s1  ;;  %v2475_v54 = vcombine.low %v2436_v35, %v2468_v47  ;;  %v2471_v53 = vcombine.low %v2420_v41, %v2452_v4  ;;  %v2476_v18 = vcombine.high %v2436_v35, %v2468_v47 }
 0x454   :  { %v2472_v17 = vcombine.high %v2420_v41, %v2452_v4  ;;  %v2609_v46 = vcombine.low %v4376_v61, %v2597_v60  ;;  %v2605_v20 = vcombine.low %v4383_v21, %v2581_v36  ;;  %v2473_v59 = vcombine.low %v4390_v49, %v4404_v1  ;;  %v2981_v61 = vpop.permute.xlu1 %2980 }
 0x455   :  { %v2469_v63 = vcombine.low %v4393_v30, %v4407_v2  ;;  %v2969_v34 = vpop.permute.xlu0 %2968  ;;  %v3007_v35 = vsel %vm1468_vm3, %v2807_v0, %v2953_v24  ;;  %v3017_v48 = vsel %vm1468_vm3, %v2943_v19, %v2981_v61 }
 0x457   :  { %2654 = vrot.lane.b32.xlu1 %v2611_v7, %s3822_s6  ;;  %2642 = vrot.lane.b32.xlu0 %v2607_v58, %s3822_s6 }
 0x458   :  { %v2985_v22 = vpop.permute.xlu1 %2984 }
 0x459   :  { %v4443_v40 = vpop.permute.xlu0 %2972  ;;  %v3018_v57 = vsel %vm96_vm0, %v3017_v48, %v2985_v22 }
 0x45b   :  { %2658 = vrot.lane.b32.xlu1 %v2612_v8, %s3825_s18  ;;  %2646 = vrot.lane.b32.xlu0 %v2608_v10, %s3825_s18 }
 0x45c   :  { %v2989_v27 = vpop.permute.xlu1 %2988 }
 0x45d   :  { %v3019_v9 = vsel %vm3009_vm9, %v3018_v57, %v2989_v27 }
 0x45f   :  { %2626 = vrot.lane.b32.xlu1 %v2474_v14, %s3823_s1  ;;  %2614 = vrot.lane.b32.xlu0 %v2470_v16, %s3823_s1 }
 0x460   :  { %v2993_v3 = vpop.permute.xlu1 %2992 }
 0x461   :  { %v3020_v1 = vsel %vm2662_vm7, %v3019_v9, %v2993_v3 }
 0x463   :  { %2630 = vrot.lane.b32.xlu1 %v2475_v54, %s3822_s6  ;;  %2618 = vrot.lane.b32.xlu0 %v2471_v53, %s3822_s6 }
 0x464   :  { %v2997_v21 = vpop.permute.xlu1 %2996 }
 0x465   :  { %v3021_v2 = vsel %vm3012_vm10, %v3020_v1, %v2997_v21 }
 0x467   :  { %2634 = vrot.lane.b32.xlu1 %v2476_v18, %s3825_s18  ;;  %2622 = vrot.lane.b32.xlu0 %v2472_v17, %s3825_s18 }
 0x468   :  { %v4441_v37 = vpop.permute.xlu1 %3000 }
 0x46b   :  { %3004 = vrot.lane.b32.xlu1 %v2950_v42, %s3826_s19  ;;  %2976 = vrot.lane.b32.xlu0 %v2814_v12, %s3826_s19 }
 0x46c   :  { %v2957_v29 = vpop.permute.xlu1 %2956 }
 0x46d   :  { %v3008_v41 = vsel %vm96_vm0, %v3007_v35, %v2957_v29 }
 0x46e   :  { %v3010_v50 = vsel %vm3009_vm9, %v3008_v41, %v2961_v11 }
 0x46f   :  { %v3011_v31 = vsel %vm2662_vm7, %v3010_v50, %v2965_v13 }
 0x470   :  { %v3013_v19 = vsel %vm3012_vm10, %v3011_v31, %v2969_v34 }
 0x4c5   :  { %v2651_v33 = vpop.permute.xlu1 %2650  ;;  %v2639_v28 = vpop.permute.xlu0 %2638 }
 0x4c6   :  { %v2672_v62 = vsel %vm96_vm0, %v2609_v46, %v2651_v33  ;;  %v2669_v25 = vsel %vm96_vm0, %v2605_v20, %v2639_v28 }
 0x4c9   :  { %v2655_v42 = vpop.permute.xlu1 %2654  ;;  %v2643_v44 = vpop.permute.xlu0 %2642 }
 0x4ca   :  { %v2673_v12 = vsel %vm2662_vm7, %v2672_v62, %v2655_v42  ;;  %v2670_v45 = vsel %vm2662_vm7, %v2669_v25, %v2643_v44 }
 0x4cd   :  { %v2659_v49 = vpop.permute.xlu1 %2658  ;;  %v2647_v30 = vpop.permute.xlu0 %2646 }
 0x4ce   :  { %v2674_v6 = vsel %vm2664_vm8, %v2673_v12, %v2659_v49  ;;  %v2671_v52 = vsel %vm2664_vm8, %v2670_v45, %v2647_v30 }
 0x4cf   :  { %2678 = vst [vmem:[#allocation10 + $0x18] sm:$0xff] %v2674_v6  ;;  %2677 = vst [vmem:[#allocation10 + $0x10] sm:$0xff] %v2671_v52 }
 0x4d1   :  { %v2627_v56 = vpop.permute.xlu1 %2626  ;;  %v2615_v51 = vpop.permute.xlu0 %2614 }
 0x4d2   :  { %v2666_v15 = vsel %vm96_vm0, %v2473_v59, %v2627_v56  ;;  %v2661_v0 = vsel %vm96_vm0, %v2469_v63, %v2615_v51  ;;  %vm3015_vm0 = vcmask 916480  }
 0x4d5   :  { %v2631_v38 = vpop.permute.xlu1 %2630  ;;  %v2619_v32 = vpop.permute.xlu0 %2618 }
 0x4d6   :  { %v2667_v55 = vsel %vm2662_vm7, %v2666_v15, %v2631_v38  ;;  %v2663_v60 = vsel %vm2662_vm7, %v2661_v0, %v2619_v32 }
 0x4d9   :  { %v2635_v36 = vpop.permute.xlu1 %2634  ;;  %v2623_v43 = vpop.permute.xlu0 %2622 }
 0x4da   :  { %v2668_v23 = vsel %vm2664_vm8, %v2667_v55, %v2635_v36  ;;  %v2665_v26 = vsel %vm2664_vm8, %v2663_v60, %v2623_v43 }
 0x4db   :  { %2676 = vst [vmem:[#allocation10 + $0x8] sm:$0xff] %v2668_v23  ;;  %2675 = vst [vmem:[#allocation10] sm:$0xff] %v2665_v26 }
 0x4dc   :  { %3769 = shalt.err (!%p3766_p8)
}
 0x4dd   :  { %s3770_s28 = scalar_lea.hbm %s4507_s4, 512 }
 0x4de   :  { %p3771_p9 = scmp.ne.s32.totalorder %s4507_s4, %s3770_s28  ;;  %p3774_p10 = scmp.lt.u32.totalorder %s3770_s28, %s4507_s4 }
 0x4e0   :  { %p3776_p11 = pnand %p3774_p10, %p3771_p9 }
 0x4e2   :  { %3779 = shalt.err (!%p3776_p11)
}
 0x4e3   :  { %3035 = dma.vmem_to_hbm [thread:$0]  %s3033_s22, 512, %s4507_s4, [#allocation4]   ;;  %v3022_v47 = vsel %vm2664_vm8, %v3021_v2, %v4441_v37  ;;  %v3005_v4 = vpop.permute.xlu1 %3004  ;;  %v3014_v5 = vsel %vm2664_vm8, %v3013_v19, %v4443_v40  ;;  %v2977_v39 = vpop.permute.xlu0 %2976 }
 0x4e4   :  { %v3023_v7 = vsel %vm3015_vm0, %v3022_v47, %v3005_v4  ;;  %v3016_v58 = vsel %vm3015_vm0, %v3014_v5, %v2977_v39  ;;  %s3780_s10 = scalar_lea.vmem %s3043_s24, 256  ;;  %p3785_p13 = scmp.lt.s32.totalorder %s3043_s24, %s3043_s24 }
 0x4e5   :  { %3025 = vst [vmem:[#allocation11 + $0x8] sm:$0xff] %v3023_v7  ;;  %3024 = vst [vmem:[#allocation11] sm:$0xff] %v3016_v58  ;;  %p3781_p12 = scmp.ne.s32.totalorder %s3043_s24, %s3780_s10  ;;  %p3786_p0 = scmp.lt.s32.totalorder %s3780_s10, %s3780_s10 }
 0x4e7   :  { %p3787_p1 = por %p3786_p0, %p3785_p13 }
 0x4e9   :  { %p3788_p2 = pnand %p3787_p1, %p3781_p12 }
 0x4eb   :  { %3791 = shalt.err (!%p3788_p2)
}
 0x4ec   :  { %s3792_s12 = scalar_lea.hbm %s4508_s5, 256 }
 0x4ed   :  { %p3793_p3 = scmp.ne.s32.totalorder %s4508_s5, %s3792_s12  ;;  %p3796_p4 = scmp.lt.u32.totalorder %s3792_s12, %s4508_s5 }
 0x4ef   :  { %p3798_p5 = pnand %p3796_p4, %p3793_p3 }
 0x4f1   :  { %3801 = shalt.err (!%p3798_p5)
}
 0x4f2   :  { %3045 = dma.vmem_to_hbm [thread:$0]  %s3043_s24, 256, %s4508_s5, [#allocation12]  }
 0x4f3   :  { %3808 = dma.done.wait [#allocation4], 512  }
 0x4f4   :  { %3809 = vsyncadd [#allocation4], 4294966784 }
 0x4f5   :  { %3810 = dma.done.wait [#allocation12], 256  }
 0x4f6   :  { %3811 = vsyncadd [#allocation12], 4294967040 }
 0x4f7   :  { %3052 = vsyncpa [#allocation3], 1 }
 0x4f8   :  { %3053 = vsyncpa [#allocation6], 1 }
 0x4f9   :  { %3054 = vsyncpa [#allocation9], 1 }
 0x4fa   :  { %3055 = vsyncpa [#allocation4], 1 }
 0x4fb   :  { %3056 = vsyncpa [#allocation12], 1 }

</bundles_post_ra>
